<compile_context>
chip_gen: v7x
topology: tpu7x:2x2x1
jax: 0.10.0
libtpu: 0.0.40
codegen_flags: <defaults>
</compile_context>

<pallas_src>
import functools
import math

import jax
import jax.numpy as jnp
from jax.experimental import pallas as pl
from jax.experimental.pallas import tpu as pltpu


def _round_up(a, b):
    return (a + b - 1) // b * b


def _telechat_mlp_kernel(x_ref, wgu_ref, wd_ref, b_ref, o_ref, acc_ref, *, tf):
    """One (token-block i, ffn-block j) step of the fused SwiGLU MLP."""
    j = pl.program_id(1)

    # Fold the down_proj bias into the accumulator init.
    @pl.when(j == 0)
    def _():
        acc_ref[...] = jnp.broadcast_to(b_ref[...].astype(jnp.float32), acc_ref.shape)

    x = x_ref[...]                                                       # (tm, H) bf16

    # Fused gate/up projection: one MXU matmul against the block-interleaved
    # (H, 2*tf) weight slab, f32 accumulation.
    gu = jnp.dot(x, wgu_ref[...], preferred_element_type=jnp.float32)    # (tm, 2*tf) f32
    gate = gu[:, :tf]                                                    # 128-aligned slices
    up = gu[:, tf:]

    # silu(gate) * up in f32: sigmoid goes to the EUP, multiplies to the VPU.
    h = (gate * jax.nn.sigmoid(gate)) * up                               # (tm, tf) f32

    # Partial down projection for this ffn block, accumulated across j.
    acc_ref[...] += jnp.dot(h.astype(wd_ref.dtype), wd_ref[...],
                            preferred_element_type=jnp.float32)          # (tm, H) f32

    @pl.when(j == pl.num_programs(1) - 1)
    def _():
        o_ref[...] = acc_ref[...].astype(o_ref.dtype)


def _select_config():
    """Per-generation (tm, tf, vmem_limit_bytes).

    v5e/v6e (128 MiB VMEM): tm=1024, tf=512, limit ~100 MiB (compute-bound).
    v7x (64 MiB VMEM) or unknown chip: tm=512, tf=256, limit ~56 MiB (safe).
    """
    try:
        info = pltpu.get_tpu_info()
        vmem_cap = int(getattr(info, "vmem_capacity_bytes", 0))
    except Exception:
        vmem_cap = 0
    if vmem_cap > (64 << 20):
        tm_t, tf_t = 1024, 512
        limit = min(100 << 20, int(vmem_cap * 0.85))
    else:
        tm_t, tf_t, limit = 512, 256, 56 << 20
    return tm_t, tf_t, limit


def telechat_mlp(x, wg, wu, wd, bias, *, tm=None, tf=None, vmem_limit_bytes=None):
    """TelechatMLP forward.

    x:    (..., H)    activations (any leading dims; e.g. (B, S, H))
    wg:   (H, F)      gate_proj weight, laid out for x @ wg
    wu:   (H, F)      up_proj weight,   laid out for x @ wu
    wd:   (F, H)      down_proj weight, laid out for h @ wd
    bias: (H,)        down_proj bias
    Returns an array with the same shape/dtype as x.
    """
    orig_shape = x.shape
    H = orig_shape[-1]
    F = wg.shape[1]
    M = math.prod(orig_shape[:-1])
    out_dtype = x.dtype

    tm_auto, tf_auto, vmem_auto = _select_config()
    tm = tm_auto if tm is None else tm
    tf = tf_auto if tf is None else tf
    vmem_limit_bytes = vmem_auto if vmem_limit_bytes is None else vmem_limit_bytes

    # Keep the MXU in bf16: an accidental f32 LHS quarters MXU throughput.
    compute_dtype = wg.dtype
    x2 = x.reshape(M, H)                        # pure reshape: no transpose
    if x2.dtype == jnp.float32 and compute_dtype == jnp.bfloat16:
        x2 = x2.astype(compute_dtype)

    # Token tiling: pad M up to a multiple of tm; padded rows are dropped.
    if M <= tm:
        tm = max(_round_up(M, 8), 8)
    m_pad = _round_up(M, tm)
    if m_pad != M:
        x2 = jnp.pad(x2, ((0, m_pad - M), (0, 0)))

    # ffn tiling: tf must divide F and stay lane-aligned (>=128, mult of 128).
    tf = min(tf, F)
    while tf >= 128 and (F % tf != 0 or tf % 128 != 0):
        tf -= 128
    if tf < 128:
        tf = F                                   # fallback: single ffn block
    nj = F // tf

    # Block-interleaved, block-contiguous fused gate/up weight:
    #   wgu[j] = [ wg[:, j*tf:(j+1)*tf] | wu[:, j*tf:(j+1)*tf] ]   -> (H, 2*tf)
    # One DMA + one MXU matmul per grid step instead of two.  (In a real model
    # this layout would be precomputed once, not rebuilt per call.)
    wgu = jnp.stack([wg.reshape(H, nj, tf), wu.reshape(H, nj, tf)], axis=2)
    wgu = jnp.transpose(wgu, (1, 0, 2, 3)).reshape(nj, H, 2 * tf)

    b2 = bias.reshape(1, H)

    kernel = functools.partial(_telechat_mlp_kernel, tf=tf)
    out = pl.pallas_call(
        kernel,
        out_shape=jax.ShapeDtypeStruct((m_pad, H), out_dtype),
        grid_spec=pltpu.PrefetchScalarGridSpec(
            num_scalar_prefetch=0,
            grid=(m_pad // tm, nj),
            in_specs=[
                pl.BlockSpec((tm, H), lambda i, j: (i, 0)),              # x (resident over j)
                pl.BlockSpec((None, H, 2 * tf), lambda i, j: (j, 0, 0)),  # fused gate/up slab
                pl.BlockSpec((tf, H), lambda i, j: (j, 0)),               # down_proj slice
                pl.BlockSpec((1, H), lambda i, j: (0, 0)),                # down_proj bias
            ],
            out_specs=pl.BlockSpec((tm, H), lambda i, j: (i, 0)),
            scratch_shapes=[pltpu.VMEM((tm, H), jnp.float32)],            # f32 accumulator
        ),
        compiler_params=pltpu.CompilerParams(
            dimension_semantics=("parallel", "arbitrary"),
            vmem_limit_bytes=vmem_limit_bytes),
    )(x2, wgu, wd, b2)

    if m_pad != M:
        out = out[:M]
    return out.reshape(orig_shape)


def _reference(x, wg, wu, wd, bias):
    xf = x.astype(jnp.float32)
    g = xf @ wg.astype(jnp.float32)
    u = xf @ wu.astype(jnp.float32)
    h = (g * jax.nn.sigmoid(g)) * u
    h = h.astype(jnp.bfloat16).astype(jnp.float32)
    return h @ wd.astype(jnp.float32) + bias.astype(jnp.float32)


if __name__ == "__main__":
    # Small shapes consistent with the module: (batch, seq, hidden) -> hidden,
    # ffn_hidden_size = 4 * hidden here.
    B, S, H, F = 2, 128, 256, 1024

    key = jax.random.PRNGKey(0)
    kx, kg, ku, kd, kb = jax.random.split(key, 5)
    x = jax.random.normal(kx, (B, S, H), dtype=jnp.float32).astype(jnp.bfloat16)
    wg = (jax.random.normal(kg, (H, F), dtype=jnp.float32) / math.sqrt(H)).astype(jnp.bfloat16)
    wu = (jax.random.normal(ku, (H, F), dtype=jnp.float32) / math.sqrt(H)).astype(jnp.bfloat16)
    wd = (jax.random.normal(kd, (F, H), dtype=jnp.float32) / math.sqrt(F)).astype(jnp.bfloat16)
    b = (jax.random.normal(kb, (H,), dtype=jnp.float32) * 0.1).astype(jnp.bfloat16)

    out = telechat_mlp(x, wg, wu, wd, b)
    out = jax.block_until_ready(out)
    assert out.shape == (B, S, H) and out.dtype == jnp.bfloat16

    ref = _reference(x, wg, wu, wd, b)
    err = float(jnp.max(jnp.abs(out.astype(jnp.float32) - ref)))
    assert err < 5e-2, f"max abs error too large: {err}"

    print("KERNEL_OK")
</pallas_src>

<mosaic_0001>
module attributes {stable_mosaic.version = 11 : i64} {
  func.func @_telechat_mlp_kernel(%arg0: i32, %arg1: i32, %arg2: memref<256x256xbf16, #tpu.memory_space<vmem>>, %arg3: memref<1x256x512xbf16, #tpu.memory_space<vmem>>, %arg4: memref<256x256xbf16, #tpu.memory_space<vmem>>, %arg5: memref<1x256xbf16, #tpu.memory_space<vmem>>, %arg6: memref<256x256xbf16, #tpu.memory_space<vmem>>, %arg7: memref<256x256xf32, #tpu.memory_space<vmem>>) attributes {dimension_semantics = [#tpu.dimension_semantics<parallel>, #tpu.dimension_semantics<arbitrary>], iteration_bounds = array<i64: 1, 4>, scalar_prefetch = 0 : i64, scratch_operands = 1 : i64, tpu.core_type = #tpu.core_type<tc>, window_params = [{transform_indices = @transform_0, window_bounds = array<i64: 256, 256>}, {transform_indices = @transform_1, window_bounds = array<i64: 1, 256, 512>}, {transform_indices = @transform_2, window_bounds = array<i64: 256, 256>}, {pipeline_mode = #tpu.pipeline_mode<synchronous>, transform_indices = @transform_3, window_bounds = array<i64: 1, 256>}, {transform_indices = @transform_4, window_bounds = array<i64: 256, 256>}]} {
    %c0_i32 = arith.constant 0 : i32
    %0 = arith.cmpi eq, %arg1, %c0_i32 : i32
    %1 = arith.extui %0 : i1 to i32
    %c0_i32_0 = arith.constant 0 : i32
    %2 = arith.cmpi ne, %1, %c0_i32_0 : i32
    scf.if %2 {
      %c0_14 = arith.constant 0 : index
      %c0_15 = arith.constant 0 : index
      %25 = vector.load %arg5[%c0_14, %c0_15] : memref<1x256xbf16, #tpu.memory_space<vmem>>, vector<1x256xbf16>
      %26 = arith.extf %25 : vector<1x256xbf16> to vector<1x256xf32>
      %27 = vector.shape_cast %26 : vector<1x256xf32> to vector<1x256xf32>
      %28 = vector.broadcast %27 : vector<1x256xf32> to vector<256x256xf32>
      %c0_16 = arith.constant 0 : index
      %c0_17 = arith.constant 0 : index
      %29 = vector.load %arg7[%c0_16, %c0_17] : memref<256x256xf32, #tpu.memory_space<vmem>>, vector<256x256xf32>
      tpu.vector_store %arg7[%c0_16, %c0_17], %28 {strides = array<i32>} : memref<256x256xf32, #tpu.memory_space<vmem>>, vector<256x256xf32>,
    } else {
    }
    %c0 = arith.constant 0 : index
    %c0_1 = arith.constant 0 : index
    %3 = vector.load %arg2[%c0, %c0_1] : memref<256x256xbf16, #tpu.memory_space<vmem>>, vector<256x256xbf16>
    %c0_2 = arith.constant 0 : index
    %c0_3 = arith.constant 0 : index
    %c0_4 = arith.constant 0 : index
    %4 = vector.load %arg3[%c0_2, %c0_3, %c0_4] : memref<1x256x512xbf16, #tpu.memory_space<vmem>>, vector<1x256x512xbf16>
    %5 = vector.shape_cast %4 : vector<1x256x512xbf16> to vector<256x512xbf16>
    %cst = arith.constant dense<0.000000e+00> : vector<256x512xf32>
    %6 = tpu.matmul %3, %5, %cst {dimension_numbers = #tpu.dot_dimension_numbers<[1], [0], [0], [1], [0, 0, 1, 1], [], []>} : vector<256x256xbf16>, vector<256x512xbf16>, vector<256x512xf32> -> vector<256x512xf32>
    %7 = vector.extract_strided_slice %6 {offsets = [0, 0], sizes = [256, 256], strides = [1, 1]} : vector<256x512xf32> to vector<256x256xf32>
    %8 = vector.extract_strided_slice %6 {offsets = [0, 256], sizes = [256, 256], strides = [1, 1]} : vector<256x512xf32> to vector<256x256xf32>
    %9 = arith.negf %7 : vector<256x256xf32>
    %10 = math.exp %9 : vector<256x256xf32>
    %cst_5 = arith.constant 1.000000e+00 : f32
    %11 = vector.broadcast %cst_5 : f32 to vector<256x256xf32>
    %12 = arith.addf %11, %10 : vector<256x256xf32>
    %13 = arith.divf %11, %12 : vector<256x256xf32>
    %14 = arith.mulf %7, %13 : vector<256x256xf32>
    %15 = arith.mulf %14, %8 : vector<256x256xf32>
    %c0_6 = arith.constant 0 : index
    %c0_7 = arith.constant 0 : index
    %16 = vector.load %arg7[%c0_6, %c0_7] : memref<256x256xf32, #tpu.memory_space<vmem>>, vector<256x256xf32>
    %17 = arith.truncf %15 : vector<256x256xf32> to vector<256x256xbf16>
    %c0_8 = arith.constant 0 : index
    %c0_9 = arith.constant 0 : index
    %18 = vector.load %arg4[%c0_8, %c0_9] : memref<256x256xbf16, #tpu.memory_space<vmem>>, vector<256x256xbf16>
    %cst_10 = arith.constant dense<0.000000e+00> : vector<256x256xf32>
    %19 = tpu.matmul %17, %18, %cst_10 {dimension_numbers = #tpu.dot_dimension_numbers<[1], [0], [0], [1], [0, 0, 1, 1], [], []>} : vector<256x256xbf16>, vector<256x256xbf16>, vector<256x256xf32> -> vector<256x256xf32>
    %20 = arith.addf %16, %19 : vector<256x256xf32>
    %c0_11 = arith.constant 0 : index
    %c0_12 = arith.constant 0 : index
    %21 = vector.load %arg7[%c0_11, %c0_12] : memref<256x256xf32, #tpu.memory_space<vmem>>, vector<256x256xf32>
    tpu.vector_store %arg7[%c0_11, %c0_12], %20 {strides = array<i32>} : memref<256x256xf32, #tpu.memory_space<vmem>>, vector<256x256xf32>,
    %c3_i32 = arith.constant 3 : i32
    %22 = arith.cmpi eq, %arg1, %c3_i32 : i32
    %23 = arith.extui %22 : i1 to i32
    %c0_i32_13 = arith.constant 0 : i32
    %24 = arith.cmpi ne, %23, %c0_i32_13 : i32
    scf.if %24 {
      %c0_14 = arith.constant 0 : index
      %c0_15 = arith.constant 0 : index
      %25 = vector.load %arg7[%c0_14, %c0_15] : memref<256x256xf32, #tpu.memory_space<vmem>>, vector<256x256xf32>
      %26 = arith.truncf %25 : vector<256x256xf32> to vector<256x256xbf16>
      %c0_16 = arith.constant 0 : index
      %c0_17 = arith.constant 0 : index
      %27 = vector.load %arg6[%c0_16, %c0_17] : memref<256x256xbf16, #tpu.memory_space<vmem>>, vector<256x256xbf16>
      tpu.vector_store %arg6[%c0_16, %c0_17], %26 {strides = array<i32>} : memref<256x256xbf16, #tpu.memory_space<vmem>>, vector<256x256xbf16>,
    } else {
    }
    return
  }
  func.func @transform_0(%arg0: i32, %arg1: i32) -> (i32, i32) {
    %c0_i32 = arith.constant 0 : i32
    %c0_i32_0 = arith.constant 0 : i32
    return %arg0, %c0_i32 : i32, i32
  }
  func.func @transform_1(%arg0: i32, %arg1: i32) -> (i32, i32, i32) {
    %c0_i32 = arith.constant 0 : i32
    %c0_i32_0 = arith.constant 0 : i32
    %c0_i32_1 = arith.constant 0 : i32
    return %arg1, %c0_i32, %c0_i32_0 : i32, i32, i32
  }
  func.func @transform_2(%arg0: i32, %arg1: i32) -> (i32, i32) {
    %c0_i32 = arith.constant 0 : i32
    %c0_i32_0 = arith.constant 0 : i32
    return %arg1, %c0_i32 : i32, i32
  }
  func.func @transform_3(%arg0: i32, %arg1: i32) -> (i32, i32) {
    %c0_i32 = arith.constant 0 : i32
    %c0_i32_0 = arith.constant 0 : i32
    %c0_i32_1 = arith.constant 0 : i32
    return %c0_i32, %c0_i32_0 : i32, i32
  }
  func.func @transform_4(%arg0: i32, %arg1: i32) -> (i32, i32) {
    %c0_i32 = arith.constant 0 : i32
    %c0_i32_0 = arith.constant 0 : i32
    return %arg0, %c0_i32 : i32, i32
  }
}

</mosaic_0001>

<bundles_post_ra>
// kernel: tpu_custom_call.1
= control target key start
LH: loop header
LB: loop body
LE: loop exit
PB: predicated region body
PF: predicated region fallthrough
CT: control target
= control target key end

     0   :  { %9 = vsyncpa [#allocation4], 0  ;;  %s4819_s0 = inlined_call_operand.hbm [shape: bf16[256,256], index: 0, kind: input, shape index: {}]   ;;  %s4820_s1 = inlined_call_operand.hbm [shape: bf16[4,256,512], index: 1, kind: input, shape index: {}]   ;;  %s4821_s2 = inlined_call_operand.hbm [shape: bf16[1024,256], index: 2, kind: input, shape index: {}]   ;;  %s4822_s3 = inlined_call_operand.vmem [shape: bf16[1,256], index: 3, kind: input, shape index: {}]   ;;  %s4823_s4 = inlined_call_operand.hbm [shape: bf16[256,256], index: 4, kind: output, shape index: {}]  }
   0x1   :  { %10 = vsyncpa [#allocation7], 0 }
   0x2   :  { %12 = vsyncpa [#allocation7 + $0x1], 0 }
   0x3   :  { %13 = vsyncpa [#allocation5], 0  ;;  %s3911_s15 = smov 0   ;;  %s3913_s16 = smov 0  }
   0x4   :  { %s3915_s17 = smov 0   ;;  %s3917_s18 = smov 0  }
   0x5   :  { %s3919_s19 = smov 0   ;;  %s3921_s20 = smov 0  }
   0x6 LB: > { %s28_s21 = sadd.s32 1, %s3870_s19  ;;  %s64_s22 = sadd.s32 1, %s3862_s17  ;;  %s3874_s20 = sphi %s3921_s20, %s19_s20   ;;  %s3870_s19 = sphi %s3919_s19, %s4932_s19   ;;  %s3866_s18 = sphi %s3917_s18, %s4931_s18   ;;  %s3862_s17 = sphi %s3915_s17, %s4930_s17   ;;  %s3858_s16 = sphi %s3913_s16, %s4929_s16   ;;  %s3854_s15 = sphi %s3911_s15, %s4928_s15  }
   0x7   : > { %p29_p0 = scmp.ge.s32.totalorder %s28_s21, 4  ;;  %p71_p1 = scmp.ne.s32.totalorder %s3862_s17, %s3858_s16 }
   0x8   : > { %p72_p2 = scmp.eq.s32.totalorder %s3874_s20, 0  ;;  %p3194_p4 = scmp.lt.s32.totalorder %s3874_s20, 4 }
   0x9   : > { %s4934_s21 = smov (%p29_p0, %s28_s21), 0  ;;  %s194_s24 = sand.u32 1, %s3874_s20  }
   0xa   : > { %p73_p3 = por %p72_p2, %p71_p1  ;;  %s61_s23 = ssub.s32 %s3870_s19, %s4934_s21 }
   0xb   : > { %p62_p5 = scmp.eq.s32.totalorder %s61_s23, 0  ;;  %s196_s25 = sand.u32 1, %s3862_s17  }
   0xc   : > { %s3103_s26 = sshll.u32 %s3870_s19, 13  ;;  %s2862_s28 = sshll.u32 %s196_s25, 9 }
   0xd   : > { %s3955_s27 = scalar_select %p62_p5, %s3862_s17, %s64_s22  }
   0xe   : > { %s3960_s5 = scalar_lea.hbm %s4820_s1, %s3103_s26  ;;  %p3962_p6 = pnand %p3194_p4, %p73_p3 }
   0xf   : > { %s198_s7 = scalar_lea.vmem [#allocation6], %s2862_s28  ;;  %s3968_s9 = sshll.u32 %s196_s25, 8 }
  0x10   : > { %s205_s8 = sshll.u32 %s198_s7, 4  ;;  %s3970_s10 = scalar_lea.sflag [#allocation7], %s194_s24  ;;  %s3966_s8 = int_to_ptr.vmem [resolvable:$true] %s205_s8 }
  0x11   : > { %s3702_s11 = scalar_lea.hbm %s3960_s5, 8192  ;;  %p3704_p8 = pneg %p3962_p6 }
  0x12   : > { %p3703_p7 = scmp.ne.s32.totalorder %s3960_s5, %s3702_s11  ;;  %s3707_s14 = scalar_lea.hbm %s4820_s1, 32768 }
  0x13   : > { %p3708_p11 = scmp.lt.u32.totalorder %s3960_s5, %s4820_s1  ;;  %p3709_p12 = scmp.lt.u32.totalorder %s3707_s14, %s3702_s11 }
  0x14   : > { %p3705_p9 = pnand %p3704_p8, %p3703_p7  ;;  %p3711_p0 = scmp.lt.u32.totalorder %s3702_s11, %s3960_s5 }
  0x15   : > { %p3710_p13 = por %p3709_p12, %p3708_p11 }
  0x16   : > { %p3706_p10 = pneg %p3705_p9 }
  0x17   : > { %p3712_p1 = por %p3711_p0, %p3710_p13 }
  0x19   : > { %p3713_p2 = pnand %p3712_p1, %p3706_p10 }
  0x1b   : > { %3716 = shalt.err (!%p3713_p2)
}
  0x1c   : > { %s3717_s24 = scalar_lea.vmem %s3966_s8, 8192  ;;  %s3876_s25 = smov [#allocation6]  }
  0x1d   : > { %p3718_p3 = scmp.ne.s32.totalorder %s3966_s8, %s3717_s24  ;;  %s3722_s26 = sshll.u32 %s3876_s25, 4  ;;  %s3723_s26 = int_to_ptr.vmem [resolvable:$false] %s3722_s26 }
  0x1e   : > { %s3724_s28 = scalar_lea.vmem %s3723_s26, 16384  ;;  %p3725_p7 = scmp.lt.s32.totalorder %s3966_s8, %s3723_s26 }
  0x1f   : > { %p3720_p4 = pnand %p3718_p3, %p3704_p8  ;;  %p3726_p9 = scmp.lt.s32.totalorder %s3724_s28, %s3717_s24 }
  0x21   : > { %p3721_p5 = pneg %p3720_p4  ;;  %p3727_p11 = por %p3726_p9, %p3725_p7 }
  0x23   : > { %p3728_p12 = pnand %p3727_p11, %p3721_p5 }
  0x25   : > { %3731 = shalt.err (!%p3728_p12)
}
  0x26   : > { %s3877_s29 = smov 256   ;;  %s3878_s30 = smov 16  }
  0x27   : > { %3189 = dma.hbm_to_vmem [thread:$0]  (!%p3962_p6), %s3960_s5, 8192, %s3966_s8, %s3970_s10, %s3877_s29, %s3877_s29, %s3878_s30  }
  0x28   : > { %s219_s7 = scalar_lea.vmem [#allocation8], %s3968_s9  ;;  %s4000_s12 = sadd.s32 4294967295, %s3874_s20  }
  0x29   : > { %s227_s11 = sshll.u32 %s219_s7, 4  ;;  %p77_p10 = scmp.ne.s32.totalorder %s3858_s16, %s3854_s15  ;;  %s4022_s11 = int_to_ptr.vmem [resolvable:$true] %s227_s11 }
  0x2a   : > { %p4824_p13 = scmp.eq.s32.totalorder %s4000_s12, 0  ;;  %p2859_p0 = scmp.ge.s32.totalorder %s3874_s20, 1 }
  0x2b   : > { %p161_p1 = scmp.lt.s32.totalorder %s3874_s20, 5  ;;  %s3879_s5 = smov [#allocation3]  }
  0x2c   : > { %p4009_p2 = por %p4824_p13, %p77_p10  ;;  %s177_s8 = sshll.u32 %s3879_s5, 4  ;;  %s4017_s8 = int_to_ptr.vmem [resolvable:$true] %s177_s8 }
  0x2d   : > { %p4013_p3 = pnand %p2859_p0, %p161_p1  ;;  %s3105_s15 = sshll.u32 %s3870_s19, 12 }
  0x2e   : > { %s4856_s13 = scalar_select %p4009_p2, 1, 0 }
  0x2f   : > { %s4857_s14 = scalar_select %p4013_p3, 1, 0 }
  0x30   : > { %p3182_p4 = pneg %p4013_p3  ;;  %s4033_s24 = scalar_lea.hbm %s4821_s2, %s3105_s15 }
  0x31   : > { %s3732_s25 = scalar_lea.hbm %s4033_s24, 4096  ;;  %s3737_s29 = scalar_lea.hbm %s4821_s2, 16384 }
  0x32   : > { %p4026_p5 = pnand %p3182_p4, %p4824_p13  ;;  %p3733_p7 = scmp.ne.s32.totalorder %s4033_s24, %s3732_s25 }
  0x33   : > { %p3738_p12 = scmp.lt.u32.totalorder %s4033_s24, %s4821_s2  ;;  %p3739_p10 = scmp.lt.u32.totalorder %s3737_s29, %s3732_s25 }
  0x34   : > { %p3735_p9 = pnand %p3733_p7, %p3704_p8  ;;  %p3741_p1 = scmp.lt.u32.totalorder %s3732_s25, %s4033_s24 }
  0x35   : > { %p3740_p0 = por %p3739_p10, %p3738_p12 }
  0x36   : > { %p3736_p11 = pneg %p3735_p9 }
  0x37   : > { %p3742_p4 = por %p3741_p1, %p3740_p0 }
  0x39   : > { %p3743_p13 = pnand %p3742_p4, %p3736_p11 }
  0x3b   : > { %3746 = shalt.err (!%p3743_p13)
}
  0x3c   : > { %s3747_s5 = scalar_lea.vmem %s4022_s11, 4096  ;;  %s3880_s15 = smov [#allocation8]  }
  0x3d   : > { %p3748_p7 = scmp.ne.s32.totalorder %s4022_s11, %s3747_s5  ;;  %s3752_s22 = sshll.u32 %s3880_s15, 4  ;;  %s3753_s22 = int_to_ptr.vmem [resolvable:$false] %s3752_s22 }
  0x3e   : > { %s3754_s23 = scalar_lea.vmem %s3753_s22, 8192  ;;  %p3755_p3 = scmp.lt.s32.totalorder %s4022_s11, %s3753_s22 }
  0x3f   : > { %p3750_p9 = pnand %p3748_p7, %p3704_p8  ;;  %p3756_p12 = scmp.lt.s32.totalorder %s3754_s23, %s3747_s5 }
  0x41   : > { %p3751_p2 = pneg %p3750_p9  ;;  %p3757_p10 = por %p3756_p12, %p3755_p3 }
  0x43   : > { %p3758_p0 = pnand %p3757_p10, %p3751_p2 }
  0x45   : > { %3761 = shalt.err (!%p3758_p0)
}
  0x46   : > { %s3881_s25 = smov 128   ;;  %s3882_s26 = smov 8  }
  0x47   : > { %3192 = dma.hbm_to_vmem [thread:$0]  (!%p3962_p6), %s4033_s24, 4096, %s4022_s11, %s3970_s10, %s3881_s25, %s3881_s25, %s3882_s26  }
  0x48   : > { %s3762_s30 = scalar_lea.hbm %s4819_s0, 4096  ;;  %p3764_p13 = pneg %p4026_p5 }
  0x49   : > { %p3763_p8 = scmp.ne.s32.totalorder %s4819_s0, %s3762_s30  ;;  %p3769_p11 = scmp.lt.u32.totalorder %s3762_s30, %s4819_s0 }
  0x4b   : > { %p3765_p2 = pnand %p3764_p13, %p3763_p8 }
  0x4d   : > { %p3766_p3 = pneg %p3765_p2 }
  0x4f   : > { %p3771_p1 = pnand %p3769_p11, %p3766_p3 }
  0x51   : > { %3774 = shalt.err (!%p3771_p1)
}
  0x52   : > { %s3775_s6 = scalar_lea.vmem %s4017_s8, 4096  ;;  %p3783_p9 = scmp.lt.s32.totalorder %s4017_s8, %s4017_s8 }
  0x53   : > { %p3776_p6 = scmp.ne.s32.totalorder %s4017_s8, %s3775_s6  ;;  %p3784_p12 = scmp.lt.s32.totalorder %s3775_s6, %s3775_s6 }
  0x55   : > { %p3778_p4 = pnand %p3776_p6, %p3764_p13  ;;  %p3785_p10 = por %p3784_p12, %p3783_p9 }
  0x57   : > { %p3779_p7 = pneg %p3778_p4 }
  0x59   : > { %p3786_p0 = pnand %p3785_p10, %p3779_p7 }
  0x5b   : > { %3789 = shalt.err (!%p3786_p0)
}
  0x5c   : > { %3185 = dma.hbm_to_vmem [thread:$0]  (!%p4026_p5), %s4819_s0, 4096, %s4017_s8, [#allocation4], %s3881_s25, %s3881_s25, %s3882_s26  }
  0x5d   : > { %p4859_p8 = scmp.ne.s32.totalorder %s4857_s14, 0 }
  0x5f   : > { %239 = sbr.rel (%p4859_p8) target bundleno = 900 (0x384), region = 36 }
  0x66   : > { %p4860_p2 = scmp.eq.s32.totalorder %s4000_s12, 0 }
  0x68   : > { %3841 = dma.done.wait (%p4860_p2), [#allocation4], 4096   ;;  %p4861_p13 = pmov %p4860_p2 }
  0x69   : > { %s245_s24 = sand.u32 1, %s4000_s12   ;;  %s247_s23 = sand.u32 1, %s3858_s16  }
  0x6a   : > { %3843 = vsyncadd (%p4861_p13), [#allocation4], 4294963200  ;;  %s2871_s9 = sshll.u32 %s247_s23, 9  ;;  %s246_s28 = scalar_lea.sflag [#allocation7], %s245_s24 }
  0x6b   : > { %s4088_s29 = scalar_lea.vmem [#allocation6], %s2871_s9  ;;  %p4862_p3 = scmp.ne.s32.totalorder %s4856_s13, 0 }
  0x6d   : > { %3845 = dma.done.wait (%p4862_p3), %s246_s28, 12288  }
  0x6e   : > { %3847 = vsyncadd (%p4862_p3), %s246_s28, 4294955008  ;;  %s2872_s14 = sshll.u32 %s247_s23, 8  ;;  %p2873_p5 = scmp.ne.s32.totalorder %s3866_s18, 0 }
  0x6f   : > { %s4094_s8 = scalar_lea.vmem [#allocation8], %s2872_s14  ;;  %v290_v0 = vld [vmem:[%s4822_s3] sm:$0x3] (!%p2873_p5)  ;;  %v293_v1 = vlaneseq (!%p2873_p5) }
  0x70   : > { %289 = sbr.rel (%p2873_p5) target bundleno = 153 (0x99), region = 52  ;;  %v291_v2 = vunpack.c.l.bf16 (!%p2873_p5), %v290_v0 }
  0x71   : > { %v294_v3 = vshrl.u32 (!%p2873_p5), %v293_v1, 7 }
  0x73   : > { %v295_v4 = vsub.s32 (!%p2873_p5), 0, %v294_v3  ;;  %v299_v5 = vsub.s32 (!%p2873_p5), 2, %v294_v3 }
  0x75   : > { %v296_v6 = vrot.slane (!%p2873_p5), %v291_v2, %v295_v4  ;;  %v300_v7 = vrot.slane (!%p2873_p5), %v291_v2, %v299_v5 }
  0x77   : > { %v306_v8 = vrot.slane %v296_v6, %v295_v4  ;;  %v4100_v9 = vrot.slane %v300_v7, %v295_v4 }
  0x79   : > { %311 = vst [vmem:[#allocation2] sm:$0xff] %v306_v8  ;;  %313 = vst [vmem:[#allocation2 + $0x10] sm:$0xff] %v306_v8 }
  0x7a   : > { %315 = vst [vmem:[#allocation2 + $0x20] sm:$0xff] %v306_v8  ;;  %317 = vst [vmem:[#allocation2 + $0x30] sm:$0xff] %v306_v8 }
  0x7b   : > { %319 = vst [vmem:[#allocation2 + $0x40] sm:$0xff] %v306_v8  ;;  %321 = vst [vmem:[#allocation2 + $0x50] sm:$0xff] %v306_v8 }
  0x7c   : > { %323 = vst [vmem:[#allocation2 + $0x60] sm:$0xff] %v306_v8  ;;  %325 = vst [vmem:[#allocation2 + $0x70] sm:$0xff] %v306_v8 }
  0x7d   : > { %327 = vst [vmem:[#allocation2 + $0x80] sm:$0xff] %v306_v8  ;;  %329 = vst [vmem:[#allocation2 + $0x90] sm:$0xff] %v306_v8 }
  0x7e   : > { %331 = vst [vmem:[#allocation2 + $0xa0] sm:$0xff] %v306_v8  ;;  %333 = vst [vmem:[#allocation2 + $0xb0] sm:$0xff] %v306_v8 }
  0x7f   : > { %335 = vst [vmem:[#allocation2 + $0xc0] sm:$0xff] %v306_v8  ;;  %337 = vst [vmem:[#allocation2 + $0xd0] sm:$0xff] %v306_v8 }
  0x80   : > { %339 = vst [vmem:[#allocation2 + $0xe0] sm:$0xff] %v306_v8  ;;  %341 = vst [vmem:[#allocation2 + $0xf0] sm:$0xff] %v306_v8 }
  0x81   : > { %343 = vst [vmem:[#allocation2 + $0x100] sm:$0xff] %v306_v8  ;;  %345 = vst [vmem:[#allocation2 + $0x110] sm:$0xff] %v306_v8 }
  0x82   : > { %347 = vst [vmem:[#allocation2 + $0x120] sm:$0xff] %v306_v8  ;;  %349 = vst [vmem:[#allocation2 + $0x130] sm:$0xff] %v306_v8 }
  0x83   : > { %351 = vst [vmem:[#allocation2 + $0x140] sm:$0xff] %v306_v8  ;;  %353 = vst [vmem:[#allocation2 + $0x150] sm:$0xff] %v306_v8 }
  0x84   : > { %355 = vst [vmem:[#allocation2 + $0x160] sm:$0xff] %v306_v8  ;;  %357 = vst [vmem:[#allocation2 + $0x170] sm:$0xff] %v306_v8 }
  0x85   : > { %359 = vst [vmem:[#allocation2 + $0x180] sm:$0xff] %v306_v8  ;;  %361 = vst [vmem:[#allocation2 + $0x190] sm:$0xff] %v306_v8 }
  0x86   : > { %363 = vst [vmem:[#allocation2 + $0x1a0] sm:$0xff] %v306_v8  ;;  %365 = vst [vmem:[#allocation2 + $0x1b0] sm:$0xff] %v306_v8 }
  0x87   : > { %367 = vst [vmem:[#allocation2 + $0x1c0] sm:$0xff] %v306_v8  ;;  %369 = vst [vmem:[#allocation2 + $0x1d0] sm:$0xff] %v306_v8 }
  0x88   : > { %371 = vst [vmem:[#allocation2 + $0x1e0] sm:$0xff] %v306_v8  ;;  %373 = vst [vmem:[#allocation2 + $0x1f0] sm:$0xff] %v306_v8 }
  0x89   : > { %312 = vst [vmem:[#allocation2 + $0x8] sm:$0xff] %v4100_v9  ;;  %314 = vst [vmem:[#allocation2 + $0x18] sm:$0xff] %v4100_v9 }
  0x8a   : > { %316 = vst [vmem:[#allocation2 + $0x28] sm:$0xff] %v4100_v9  ;;  %318 = vst [vmem:[#allocation2 + $0x38] sm:$0xff] %v4100_v9 }
  0x8b   : > { %320 = vst [vmem:[#allocation2 + $0x48] sm:$0xff] %v4100_v9  ;;  %322 = vst [vmem:[#allocation2 + $0x58] sm:$0xff] %v4100_v9 }
  0x8c   : > { %324 = vst [vmem:[#allocation2 + $0x68] sm:$0xff] %v4100_v9  ;;  %326 = vst [vmem:[#allocation2 + $0x78] sm:$0xff] %v4100_v9 }
  0x8d   : > { %328 = vst [vmem:[#allocation2 + $0x88] sm:$0xff] %v4100_v9  ;;  %330 = vst [vmem:[#allocation2 + $0x98] sm:$0xff] %v4100_v9 }
  0x8e   : > { %332 = vst [vmem:[#allocation2 + $0xa8] sm:$0xff] %v4100_v9  ;;  %334 = vst [vmem:[#allocation2 + $0xb8] sm:$0xff] %v4100_v9 }
  0x8f   : > { %336 = vst [vmem:[#allocation2 + $0xc8] sm:$0xff] %v4100_v9  ;;  %338 = vst [vmem:[#allocation2 + $0xd8] sm:$0xff] %v4100_v9 }
  0x90   : > { %340 = vst [vmem:[#allocation2 + $0xe8] sm:$0xff] %v4100_v9  ;;  %342 = vst [vmem:[#allocation2 + $0xf8] sm:$0xff] %v4100_v9 }
  0x91   : > { %344 = vst [vmem:[#allocation2 + $0x108] sm:$0xff] %v4100_v9  ;;  %346 = vst [vmem:[#allocation2 + $0x118] sm:$0xff] %v4100_v9 }
  0x92   : > { %348 = vst [vmem:[#allocation2 + $0x128] sm:$0xff] %v4100_v9  ;;  %350 = vst [vmem:[#allocation2 + $0x138] sm:$0xff] %v4100_v9 }
  0x93   : > { %352 = vst [vmem:[#allocation2 + $0x148] sm:$0xff] %v4100_v9  ;;  %354 = vst [vmem:[#allocation2 + $0x158] sm:$0xff] %v4100_v9 }
  0x94   : > { %356 = vst [vmem:[#allocation2 + $0x168] sm:$0xff] %v4100_v9  ;;  %358 = vst [vmem:[#allocation2 + $0x178] sm:$0xff] %v4100_v9 }
  0x95   : > { %360 = vst [vmem:[#allocation2 + $0x188] sm:$0xff] %v4100_v9  ;;  %362 = vst [vmem:[#allocation2 + $0x198] sm:$0xff] %v4100_v9 }
  0x96   : > { %364 = vst [vmem:[#allocation2 + $0x1a8] sm:$0xff] %v4100_v9  ;;  %366 = vst [vmem:[#allocation2 + $0x1b8] sm:$0xff] %v4100_v9 }
  0x97   : > { %368 = vst [vmem:[#allocation2 + $0x1c8] sm:$0xff] %v4100_v9  ;;  %370 = vst [vmem:[#allocation2 + $0x1d8] sm:$0xff] %v4100_v9 }
  0x98   : > { %372 = vst [vmem:[#allocation2 + $0x1e8] sm:$0xff] %v4100_v9  ;;  %374 = vst [vmem:[#allocation2 + $0x1f8] sm:$0xff] %v4100_v9 }
  0x99 PF: > { %v3254_v10 = vld [vmem:[%s4088_s29 + $0x4] ss:$16 sps:$4 sm:$0xff]   ;;  %v3256_v11 = vld [vmem:[%s4088_s29] ss:$16 sps:$4 sm:$0xff]   ;;  %v3307_v45 = vld [vmem:[%s4088_s29 + $0xc] ss:$16 sps:$4 sm:$0xff]  }
  0x9a   : > { %3138 = vmatprep.subr.bf16.mxu1 %v3254_v10  ;;  %v3257_v12 = vld [vmem:[%s4088_s29 + $0x24] ss:$16 sps:$4 sm:$0xff]   ;;  %951 = vmatprep.subr.bf16.mxu0 %v3254_v10  ;;  %v3259_v13 = vld [vmem:[%s4088_s29 + $0x20] ss:$16 sps:$4 sm:$0xff]   ;;  %v3305_v46 = vld [vmem:[%s4088_s29 + $0x8] ss:$16 sps:$4 sm:$0xff]  }
  0x9b   : > { %3154 = vmatpush1.bf16.msra.mxu1 %v3256_v11  ;;  %952 = vmatpush1.bf16.msra.mxu0 %v3256_v11  ;;  %v3260_v14 = vld [vmem:[%s4088_s29 + $0x44] ss:$16 sps:$4 sm:$0xff]   ;;  %v3262_v15 = vld [vmem:[%s4088_s29 + $0x40] ss:$16 sps:$4 sm:$0xff]   ;;  %v3310_v47 = vld [vmem:[%s4088_s29 + $0x2c] ss:$16 sps:$4 sm:$0xff]  }
  0x9c   : > { %3139 = vmatprep.subr.bf16.mxu1 %v3257_v12  ;;  %953 = vmatprep.subr.bf16.mxu0 %v3257_v12  ;;  %v3263_v16 = vld [vmem:[%s4088_s29 + $0x64] ss:$16 sps:$4 sm:$0xff]   ;;  %v3265_v17 = vld [vmem:[%s4088_s29 + $0x60] ss:$16 sps:$4 sm:$0xff]   ;;  %v3308_v51 = vld [vmem:[%s4088_s29 + $0x28] ss:$16 sps:$4 sm:$0xff]  }
  0x9d   : > { %v3266_v18 = vld [vmem:[%s4088_s29 + $0x84] ss:$16 sps:$4 sm:$0xff]   ;;  %v3268_v19 = vld [vmem:[%s4088_s29 + $0x80] ss:$16 sps:$4 sm:$0xff]   ;;  %v3319_v52 = vld [vmem:[%s4088_s29 + $0x4c] ss:$16 sps:$4 sm:$0xff]  }
  0x9e   : > { %v3269_v20 = vld [vmem:[%s4088_s29 + $0xa4] ss:$16 sps:$4 sm:$0xff]   ;;  %v3271_v21 = vld [vmem:[%s4088_s29 + $0xa0] ss:$16 sps:$4 sm:$0xff]   ;;  %v3317_v55 = vld [vmem:[%s4088_s29 + $0x48] ss:$16 sps:$4 sm:$0xff]  }
  0x9f   : > { %3155 = vmatpush1.bf16.msra.mxu1 %v3259_v13  ;;  %954 = vmatpush1.bf16.msra.mxu0 %v3259_v13  ;;  %v3272_v22 = vld [vmem:[%s4088_s29 + $0xc4] ss:$16 sps:$4 sm:$0xff]   ;;  %v3274_v24 = vld [vmem:[%s4088_s29 + $0xc0] ss:$16 sps:$4 sm:$0xff]   ;;  %v3322_v57 = vld [vmem:[%s4088_s29 + $0x6c] ss:$16 sps:$4 sm:$0xff]  }
  0xa0   : > { %3140 = vmatprep.subr.bf16.mxu1 %v3260_v14  ;;  %955 = vmatprep.subr.bf16.mxu0 %v3260_v14  ;;  %v4147_v23 = vld [vmem:[#allocation3 + $0x84] ss:$8 sps:$4 sm:$0xff]   ;;  %v3277_v27 = vld [vmem:[%s4088_s29 + $0xe0] ss:$16 sps:$4 sm:$0xff]   ;;  %v4179_v49 = vld [vmem:[#allocation3 + $0x94] ss:$8 sps:$4 sm:$0xff]  }
  0xa1   : > { %v3275_v25 = vld [vmem:[%s4088_s29 + $0xe4] ss:$16 sps:$4 sm:$0xff]   ;;  %1063 = vmatprep.mubr.bf16.mxu1 %v4147_v23  ;;  %v3280_v29 = vld [vmem:[%s4088_s29 + $0x100] ss:$16 sps:$4 sm:$0xff]   ;;  %v3320_v59 = vld [vmem:[%s4088_s29 + $0x68] ss:$16 sps:$4 sm:$0xff]  }
  0xa2   : > { %v4152_v26 = vld [vmem:[#allocation3 + $0x4] ss:$8 sps:$4 sm:$0xff]   ;;  %v3283_v31 = vld [vmem:[%s4088_s29 + $0x120] ss:$16 sps:$4 sm:$0xff]   ;;  %v4181_v50 = vld [vmem:[#allocation3 + $0x14] ss:$8 sps:$4 sm:$0xff]  }
  0xa3   : > { %3156 = vmatpush1.bf16.msra.mxu1 %v3262_v15  ;;  %956 = vmatpush1.bf16.msra.mxu0 %v3262_v15  ;;  %v3278_v28 = vld [vmem:[%s4088_s29 + $0x104] ss:$16 sps:$4 sm:$0xff]   ;;  %v3286_v33 = vld [vmem:[%s4088_s29 + $0x140] ss:$16 sps:$4 sm:$0xff]   ;;  %v3331_v60 = vld [vmem:[%s4088_s29 + $0x8c] ss:$16 sps:$4 sm:$0xff]  }
  0xa4   : > { %3141 = vmatprep.subr.bf16.mxu1 %v3263_v16  ;;  %957 = vmatprep.subr.bf16.mxu0 %v3263_v16  ;;  %v3281_v30 = vld [vmem:[%s4088_s29 + $0x124] ss:$16 sps:$4 sm:$0xff]   ;;  %v3289_v35 = vld [vmem:[%s4088_s29 + $0x160] ss:$16 sps:$4 sm:$0xff]   ;;  %v3329_v63 = vld [vmem:[%s4088_s29 + $0x88] ss:$16 sps:$4 sm:$0xff]  }
  0xa5   : > { %983 = vmatprep.mubr.bf16.mxu0 %v4152_v26  ;;  %v3284_v32 = vld [vmem:[%s4088_s29 + $0x144] ss:$16 sps:$4 sm:$0xff]   ;;  %v3292_v37 = vld [vmem:[%s4088_s29 + $0x180] ss:$16 sps:$4 sm:$0xff]   ;;  %v3334_v1 = vld [vmem:[%s4088_s29 + $0xac] ss:$16 sps:$4 sm:$0xff]  }
  0xa6   : > { %v3287_v34 = vld [vmem:[%s4088_s29 + $0x164] ss:$16 sps:$4 sm:$0xff]   ;;  %v3295_v39 = vld [vmem:[%s4088_s29 + $0x1a0] ss:$16 sps:$4 sm:$0xff]   ;;  %v3332_v3 = vld [vmem:[%s4088_s29 + $0xa8] ss:$16 sps:$4 sm:$0xff]  }
  0xa7   : > { %3157 = vmatpush1.bf16.msra.mxu1 %v3265_v17  ;;  %958 = vmatpush1.bf16.msra.mxu0 %v3265_v17  ;;  %v3290_v36 = vld [vmem:[%s4088_s29 + $0x184] ss:$16 sps:$4 sm:$0xff]   ;;  %v3298_v41 = vld [vmem:[%s4088_s29 + $0x1c0] ss:$16 sps:$4 sm:$0xff]   ;;  %v3343_v4 = vld [vmem:[%s4088_s29 + $0xcc] ss:$16 sps:$4 sm:$0xff]  }
  0xa8   : > { %3142 = vmatprep.subr.bf16.mxu1 %v3266_v18  ;;  %959 = vmatprep.subr.bf16.mxu0 %v3266_v18  ;;  %v3293_v38 = vld [vmem:[%s4088_s29 + $0x1a4] ss:$16 sps:$4 sm:$0xff]   ;;  %v3301_v43 = vld [vmem:[%s4088_s29 + $0x1e0] ss:$16 sps:$4 sm:$0xff]   ;;  %v3341_v7 = vld [vmem:[%s4088_s29 + $0xc8] ss:$16 sps:$4 sm:$0xff]  }
  0xa9   : > { %v3296_v40 = vld [vmem:[%s4088_s29 + $0x1c4] ss:$16 sps:$4 sm:$0xff]   ;;  %v4172_v44 = vld [vmem:[#allocation3 + $0x80] ss:$8 sps:$4 sm:$0xff]   ;;  %v4188_v53 = vld [vmem:[#allocation3 + $0x90] ss:$8 sps:$4 sm:$0xff]  }
  0xaa   : > { %v3299_v42 = vld [vmem:[%s4088_s29 + $0x1e4] ss:$16 sps:$4 sm:$0xff]   ;;  %v4177_v48 = vld [vmem:[#allocation3] ss:$8 sps:$4 sm:$0xff]   ;;  %v4191_v54 = vld [vmem:[#allocation3 + $0x10] ss:$8 sps:$4 sm:$0xff]  }
  0xab   : > { %3158 = vmatpush1.bf16.msra.mxu1 %v3268_v19  ;;  %960 = vmatpush1.bf16.msra.mxu0 %v3268_v19  ;;  %v4194_v56 = vld [vmem:[#allocation3 + $0xa4] ss:$8 sps:$4 sm:$0xff]   ;;  %v4205_v61 = vld [vmem:[#allocation3 + $0xa0] ss:$8 sps:$4 sm:$0xff]   ;;  %v4210_v0 = vld [vmem:[#allocation3 + $0xb4] ss:$8 sps:$4 sm:$0xff]  }
  0xac   : > { %3143 = vmatprep.subr.bf16.mxu1 %v3269_v20  ;;  %961 = vmatprep.subr.bf16.mxu0 %v3269_v20  ;;  %v4197_v58 = vld [vmem:[#allocation3 + $0x24] ss:$8 sps:$4 sm:$0xff]   ;;  %v4207_v62 = vld [vmem:[#allocation3 + $0x20] ss:$8 sps:$4 sm:$0xff]   ;;  %v4213_v2 = vld [vmem:[#allocation3 + $0x34] ss:$8 sps:$4 sm:$0xff]  }
  0xad   : > { %v4221_v5 = vld [vmem:[#allocation3 + $0xb0] ss:$8 sps:$4 sm:$0xff]   ;;  %v4226_v8 = vld [vmem:[#allocation3 + $0xc4] ss:$8 sps:$4 sm:$0xff]   ;;  %v4237_v13 = vld [vmem:[#allocation3 + $0xc0] ss:$8 sps:$4 sm:$0xff]  }
  0xae   : > { %v4223_v6 = vld [vmem:[#allocation3 + $0x30] ss:$8 sps:$4 sm:$0xff]   ;;  %v3346_v9 = vld [vmem:[%s4088_s29 + $0xec] ss:$16 sps:$4 sm:$0xff]   ;;  %v4239_v14 = vld [vmem:[#allocation3 + $0x40] ss:$8 sps:$4 sm:$0xff]  }
  0xaf   : > { %3159 = vmatpush1.bf16.msra.mxu1 %v3271_v21  ;;  %962 = vmatpush1.bf16.msra.mxu0 %v3271_v21  ;;  %v4229_v10 = vld [vmem:[#allocation3 + $0x44] ss:$8 sps:$4 sm:$0xff]   ;;  %v3344_v11 = vld [vmem:[%s4088_s29 + $0xe8] ss:$16 sps:$4 sm:$0xff]   ;;  %v4242_v16 = vld [vmem:[#allocation3 + $0xd4] ss:$8 sps:$4 sm:$0xff]  }
  0xb0   : > { %3144 = vmatprep.subr.bf16.mxu1 %v3272_v22  ;;  %963 = vmatprep.subr.bf16.mxu0 %v3272_v22  ;;  %v3355_v12 = vld [vmem:[%s4088_s29 + $0x10c] ss:$16 sps:$4 sm:$0xff]   ;;  %v3353_v15 = vld [vmem:[%s4088_s29 + $0x108] ss:$16 sps:$4 sm:$0xff]   ;;  %p3066_p11 = scmp.ne.s32.totalorder %s3866_s18, 3 }
  0xb1   : > { %v3358_v17 = vld [vmem:[%s4088_s29 + $0x12c] ss:$16 sps:$4 sm:$0xff]   ;;  %v3356_v19 = vld [vmem:[%s4088_s29 + $0x128] ss:$16 sps:$4 sm:$0xff]  }
  0xb2   : > { %v4245_v18 = vld [vmem:[#allocation3 + $0x54] ss:$8 sps:$4 sm:$0xff]   ;;  %v4253_v21 = vld [vmem:[#allocation3 + $0xd0] ss:$8 sps:$4 sm:$0xff]  }
  0xb3   : > { %3160 = vmatpush1.bf16.msra.mxu1 %v3274_v24  ;;  %964 = vmatpush1.bf16.msra.mxu0 %v3274_v24  ;;  %v3367_v20 = vld [vmem:[%s4088_s29 + $0x14c] ss:$16 sps:$4 sm:$0xff]   ;;  %v3375_v22 = vld [vmem:[#allocation3 + $0x50] ss:$8 sps:$4 sm:$0xff]  }
  0xb4   : > { %3145 = vmatprep.subr.bf16.mxu1 %v3275_v25  ;;  %965 = vmatprep.subr.bf16.mxu0 %v3275_v25  ;;  %v3365_v24 = vld [vmem:[%s4088_s29 + $0x148] ss:$16 sps:$4 sm:$0xff]   ;;  %v4256_v25 = vld [vmem:[#allocation3 + $0xe4] ss:$8 sps:$4 sm:$0xff]  }
  0xb7   : > { %3161 = vmatpush1.bf16.msra.mxu1 %v3277_v27  ;;  %966 = vmatpush1.bf16.msra.mxu0 %v3277_v27  ;;  %v3370_v27 = vld [vmem:[%s4088_s29 + $0x16c] ss:$16 sps:$4 sm:$0xff]  }
  0xb8   : > { %3146 = vmatprep.subr.bf16.mxu1 %v3278_v28  ;;  %967 = vmatprep.subr.bf16.mxu0 %v3278_v28  ;;  %v3383_v28 = vld [vmem:[#allocation3 + $0x64] ss:$8 sps:$4 sm:$0xff]  }
  0xbb   : > { %3162 = vmatpush1.bf16.msra.mxu1 %v3280_v29  ;;  %968 = vmatpush1.bf16.msra.mxu0 %v3280_v29  ;;  %v3368_v29 = vld [vmem:[%s4088_s29 + $0x168] ss:$16 sps:$4 sm:$0xff]  }
  0xbc   : > { %3147 = vmatprep.subr.bf16.mxu1 %v3281_v30  ;;  %969 = vmatprep.subr.bf16.mxu0 %v3281_v30  ;;  %v3379_v30 = vld [vmem:[%s4088_s29 + $0x18c] ss:$16 sps:$4 sm:$0xff]  }
  0xbf   : > { %3163 = vmatpush1.bf16.msra.mxu1 %v3283_v31  ;;  %970 = vmatpush1.bf16.msra.mxu0 %v3283_v31  ;;  %v4263_v31 = vld [vmem:[#allocation3 + $0xe0] ss:$8 sps:$4 sm:$0xff]  }
  0xc0   : > { %3148 = vmatprep.subr.bf16.mxu1 %v3284_v32  ;;  %971 = vmatprep.subr.bf16.mxu0 %v3284_v32  ;;  %v3387_v32 = vld [vmem:[#allocation3 + $0x60] ss:$8 sps:$4 sm:$0xff]  }
  0xc3   : > { %3164 = vmatpush1.bf16.msra.mxu1 %v3286_v33  ;;  %972 = vmatpush1.bf16.msra.mxu0 %v3286_v33  ;;  %v3377_v33 = vld [vmem:[%s4088_s29 + $0x188] ss:$16 sps:$4 sm:$0xff]  }
  0xc4   : > { %3149 = vmatprep.subr.bf16.mxu1 %v3287_v34  ;;  %973 = vmatprep.subr.bf16.mxu0 %v3287_v34  ;;  %v4266_v34 = vld [vmem:[#allocation3 + $0xf4] ss:$8 sps:$4 sm:$0xff]  }
  0xc7   : > { %3165 = vmatpush1.bf16.msra.mxu1 %v3289_v35  ;;  %974 = vmatpush1.bf16.msra.mxu0 %v3289_v35  ;;  %v3382_v35 = vld [vmem:[%s4088_s29 + $0x1ac] ss:$16 sps:$4 sm:$0xff]  }
  0xc8   : > { %3150 = vmatprep.subr.bf16.mxu1 %v3290_v36  ;;  %975 = vmatprep.subr.bf16.mxu0 %v3290_v36  ;;  %v3395_v36 = vld [vmem:[#allocation3 + $0x74] ss:$8 sps:$4 sm:$0xff]  }
  0xcb   : > { %3166 = vmatpush1.bf16.msra.mxu1 %v3292_v37  ;;  %976 = vmatpush1.bf16.msra.mxu0 %v3292_v37  ;;  %v3380_v37 = vld [vmem:[%s4088_s29 + $0x1a8] ss:$16 sps:$4 sm:$0xff]  }
  0xcc   : > { %3151 = vmatprep.subr.bf16.mxu1 %v3293_v38  ;;  %977 = vmatprep.subr.bf16.mxu0 %v3293_v38  ;;  %v3391_v38 = vld [vmem:[%s4088_s29 + $0x1cc] ss:$16 sps:$4 sm:$0xff]  }
  0xcf   : > { %3167 = vmatpush1.bf16.msra.mxu1 %v3295_v39  ;;  %978 = vmatpush1.bf16.msra.mxu0 %v3295_v39  ;;  %v4273_v39 = vld [vmem:[#allocation3 + $0xf0] ss:$8 sps:$4 sm:$0xff]  }
  0xd0   : > { %3152 = vmatprep.subr.bf16.mxu1 %v3296_v40  ;;  %979 = vmatprep.subr.bf16.mxu0 %v3296_v40  ;;  %v3397_v40 = vld [vmem:[#allocation3 + $0x70] ss:$8 sps:$4 sm:$0xff]  }
  0xd3   : > { %3168 = vmatpush1.bf16.msra.mxu1 %v3298_v41  ;;  %980 = vmatpush1.bf16.msra.mxu0 %v3298_v41  ;;  %v3389_v41 = vld [vmem:[%s4088_s29 + $0x1c8] ss:$16 sps:$4 sm:$0xff]  }
  0xd4   : > { %3153 = vmatprep.subr.bf16.mxu1 %v3299_v42  ;;  %981 = vmatprep.subr.bf16.mxu0 %v3299_v42  ;;  %v3394_v42 = vld [vmem:[%s4088_s29 + $0x1ec] ss:$16 sps:$4 sm:$0xff]  }
  0xd7   : > { %3169 = vmatpush1.bf16.msra.mxu1 %v3301_v43  ;;  %982 = vmatpush1.bf16.msra.mxu0 %v3301_v43  ;;  %v3392_v43 = vld [vmem:[%s4088_s29 + $0x1e8] ss:$16 sps:$4 sm:$0xff]  }
  0xd8   : > { %1144 = vmatprep.subr.bf16.mxu1 %v3307_v45  ;;  %v3398_v45 = vld [vmem:[%s4094_s8] ss:$8 sps:$4 sm:$0xff]  }
  0xda   : > { %1064 = vmatmul.mubr.bf16.vlgmr.msra.gmra.mrb[0].mxu1 %v4172_v44  ;;  %984 = vmatmul.mubr.bf16.vlgmr.msra.gmra.mrb[0].mxu0 %v4177_v48 }
  0xdb   : > { %1145 = vmatpush1.bf16.msra.mxu1 %v3305_v46  ;;  %1073 = vmatprep.mubr.bf16.mxu1 %v4179_v49  ;;  %v3403_v46 = vld [vmem:[%s4094_s8 + $0x14] ss:$8 sps:$4 sm:$0xff]  }
  0xdc   : > { %1146 = vmatprep.subr.bf16.mxu1 %v3310_v47  ;;  %993 = vmatprep.mubr.bf16.mxu0 %v4181_v50  ;;  %v3401_v47 = vld [vmem:[%s4094_s8 + $0x10] ss:$8 sps:$4 sm:$0xff]  }
  0xdf   : > { %1147 = vmatpush1.bf16.msra.mxu1 %v3308_v51  ;;  %v3409_v51 = vld [vmem:[%s4094_s8 + $0x34] ss:$8 sps:$4 sm:$0xff]  }
  0xe0   : > { %1148 = vmatprep.subr.bf16.mxu1 %v3319_v52  ;;  %v3407_v52 = vld [vmem:[%s4094_s8 + $0x30] ss:$8 sps:$4 sm:$0xff]  }
  0xe2   : > { %1074 = vmatmul.mubr.bf16.gmra.mrb[4].mxu1 %v4188_v53  ;;  %994 = vmatmul.mubr.bf16.gmra.mrb[4].mxu0 %v4191_v54 }
  0xe3   : > { %1149 = vmatpush1.bf16.msra.mxu1 %v3317_v55  ;;  %1083 = vmatprep.mubr.bf16.mxu1 %v4194_v56  ;;  %v3410_v55 = vld [vmem:[%s4094_s8 + $0x40] ss:$8 sps:$4 sm:$0xff]  }
  0xe4   : > { %1150 = vmatprep.subr.bf16.mxu1 %v3322_v57  ;;  %1003 = vmatprep.mubr.bf16.mxu0 %v4197_v58  ;;  %v3415_v57 = vld [vmem:[%s4094_s8 + $0x54] ss:$8 sps:$4 sm:$0xff]  }
  0xe7   : > { %1151 = vmatpush1.bf16.msra.mxu1 %v3320_v59  ;;  %v3418_v59 = vld [vmem:[%s4094_s8 + $0x64] ss:$8 sps:$4 sm:$0xff]  }
  0xe8   : > { %1152 = vmatprep.subr.bf16.mxu1 %v3331_v60  ;;  %v3427_v60 = vld [vmem:[%s4094_s8 + $0x94] ss:$8 sps:$4 sm:$0xff]  }
  0xea   : > { %1084 = vmatmul.mubr.bf16.gmra.mrb[8].mxu1 %v4205_v61  ;;  %1004 = vmatmul.mubr.bf16.gmra.mrb[8].mxu0 %v4207_v62 }
  0xeb   : > { %1153 = vmatpush1.bf16.msra.mxu1 %v3329_v63  ;;  %1093 = vmatprep.mubr.bf16.mxu1 %v4210_v0  ;;  %v3428_v63 = vld [vmem:[%s4094_s8 + $0xa0] ss:$8 sps:$4 sm:$0xff]  }
  0xec   : > { %1154 = vmatprep.subr.bf16.mxu1 %v3334_v1  ;;  %1013 = vmatprep.mubr.bf16.mxu0 %v4213_v2  ;;  %v3431_v1 = vld [vmem:[%s4094_s8 + $0xb0] ss:$8 sps:$4 sm:$0xff]  }
  0xef   : > { %1155 = vmatpush1.bf16.msra.mxu1 %v3332_v3  ;;  %v3434_v3 = vld [vmem:[%s4094_s8 + $0xc0] ss:$8 sps:$4 sm:$0xff]  }
  0xf0   : > { %1156 = vmatprep.subr.bf16.mxu1 %v3343_v4  ;;  %v3439_v4 = vld [vmem:[%s4094_s8 + $0xd4] ss:$8 sps:$4 sm:$0xff]  }
  0xf2   : > { %1094 = vmatmul.mubr.bf16.gmra.mrb[12].mxu1 %v4221_v5  ;;  %1014 = vmatmul.mubr.bf16.gmra.mrb[12].mxu0 %v4223_v6 }
  0xf3   : > { %1157 = vmatpush1.bf16.msra.mxu1 %v3341_v7  ;;  %1103 = vmatprep.mubr.bf16.mxu1 %v4226_v8  ;;  %v3440_v7 = vld [vmem:[%s4094_s8 + $0xe0] ss:$8 sps:$4 sm:$0xff]  }
  0xf4   : > { %1158 = vmatprep.subr.bf16.mxu1 %v3346_v9  ;;  %1023 = vmatprep.mubr.bf16.mxu0 %v4229_v10  ;;  %v3443_v9 = vld [vmem:[%s4094_s8 + $0xf0] ss:$8 sps:$4 sm:$0xff]  }
  0xf7   : > { %1159 = vmatpush1.bf16.msra.mxu1 %v3344_v11 }
  0xf8   : > { %1160 = vmatprep.subr.bf16.mxu1 %v3355_v12 }
  0xfa   : > { %1104 = vmatmul.mubr.bf16.gmra.mrb[16].mxu1 %v4237_v13  ;;  %1024 = vmatmul.mubr.bf16.gmra.mrb[16].mxu0 %v4239_v14 }
  0xfb   : > { %1161 = vmatpush1.bf16.msra.mxu1 %v3353_v15  ;;  %1113 = vmatprep.mubr.bf16.mxu1 %v4242_v16 }
  0xfc   : > { %1162 = vmatprep.subr.bf16.mxu1 %v3358_v17  ;;  %1033 = vmatprep.mubr.bf16.mxu0 %v4245_v18 }
  0xff   : > { %1163 = vmatpush1.bf16.msra.mxu1 %v3356_v19 }
 0x100   : > { %1164 = vmatprep.subr.bf16.mxu1 %v3367_v20 }
 0x102   : > { %1114 = vmatmul.mubr.bf16.gmra.mrb[20].mxu1 %v4253_v21  ;;  %1034 = vmatmul.mubr.bf16.gmra.mrb[20].mxu0 %v3375_v22 }
 0x103   : > { %1165 = vmatpush1.bf16.msra.mxu1 %v3365_v24  ;;  %1123 = vmatprep.mubr.bf16.mxu1 %v4256_v25 }
 0x104   : > { %1166 = vmatprep.subr.bf16.mxu1 %v3370_v27  ;;  %1043 = vmatprep.mubr.bf16.mxu0 %v3383_v28 }
 0x107   : > { %1167 = vmatpush1.bf16.msra.mxu1 %v3368_v29 }
 0x108   : > { %1168 = vmatprep.subr.bf16.mxu1 %v3379_v30 }
 0x10a   : > { %1124 = vmatmul.mubr.bf16.gmra.mrb[24].mxu1 %v4263_v31  ;;  %1044 = vmatmul.mubr.bf16.gmra.mrb[24].mxu0 %v3387_v32 }
 0x10b   : > { %1169 = vmatpush1.bf16.msra.mxu1 %v3377_v33  ;;  %1133 = vmatprep.mubr.bf16.mxu1 %v4266_v34 }
 0x10c   : > { %1170 = vmatprep.subr.bf16.mxu1 %v3382_v35  ;;  %1053 = vmatprep.mubr.bf16.mxu0 %v3395_v36 }
 0x10f   : > { %1171 = vmatpush1.bf16.msra.mxu1 %v3380_v37 }
 0x110   : > { %1172 = vmatprep.subr.bf16.mxu1 %v3391_v38 }
 0x112   : > { %1134 = vmatmul.mubr.bf16.gmra.mrb[28].mxu1 %v4273_v39  ;;  %1054 = vmatmul.mubr.bf16.gmra.mrb[28].mxu0 %v3397_v40 }
 0x113   : > { %1173 = vmatpush1.bf16.msra.mxu1 %v3389_v41  ;;  %1176 = vmatprep.mubr.bf16.mxu1 %v4152_v26  ;;  %v3400_v26 = vld [vmem:[%s4094_s8 + $0x4] ss:$8 sps:$4 sm:$0xff]  }
 0x114   : > { %1174 = vmatprep.subr.bf16.mxu1 %v3394_v42  ;;  %2137 = vmatprep.subr.bf16.mxu0 %v3400_v26 }
 0x115   : > { %2138 = vmatpush1.bf16.msra.mxu0 %v3398_v45 }
 0x116   : > { %2139 = vmatprep.subr.bf16.mxu0 %v3403_v46 }
 0x117   : > { %1175 = vmatpush1.bf16.msra.mxu1 %v3392_v43 }
 0x119   : > { %2140 = vmatpush1.bf16.msra.mxu0 %v3401_v47 }
 0x11a   : > { %1177 = vmatmul.mubr.bf16.vlgmr.msra.gmra.mrb[32].mxu1 %v4177_v48  ;;  %v3406_v48 = vld [vmem:[%s4094_s8 + $0x24] ss:$8 sps:$4 sm:$0xff]  }
 0x11b   : > { %1186 = vmatprep.mubr.bf16.mxu1 %v4181_v50  ;;  %v3404_v50 = vld [vmem:[%s4094_s8 + $0x20] ss:$8 sps:$4 sm:$0xff]   ;;  %2141 = vmatprep.subr.bf16.mxu0 %v3406_v48 }
 0x11d   : > { %2142 = vmatpush1.bf16.msra.mxu0 %v3404_v50 }
 0x11e   : > { %2143 = vmatprep.subr.bf16.mxu0 %v3409_v51 }
 0x121   : > { %2144 = vmatpush1.bf16.msra.mxu0 %v3407_v52 }
 0x122   : > { %1187 = vmatmul.mubr.bf16.gmra.mrb[36].mxu1 %v4191_v54  ;;  %v3412_v54 = vld [vmem:[%s4094_s8 + $0x44] ss:$8 sps:$4 sm:$0xff]  }
 0x123   : > { %1196 = vmatprep.mubr.bf16.mxu1 %v4197_v58  ;;  %2145 = vmatprep.subr.bf16.mxu0 %v3412_v54  ;;  %v3413_v58 = vld [vmem:[%s4094_s8 + $0x50] ss:$8 sps:$4 sm:$0xff]  }
 0x125   : > { %2146 = vmatpush1.bf16.msra.mxu0 %v3410_v55 }
 0x126   : > { %2147 = vmatprep.subr.bf16.mxu0 %v3415_v57 }
 0x129   : > { %2148 = vmatpush1.bf16.msra.mxu0 %v3413_v58 }
 0x12a   : > { %1197 = vmatmul.mubr.bf16.gmra.mrb[40].mxu1 %v4207_v62  ;;  %2149 = vmatprep.subr.bf16.mxu0 %v3418_v59  ;;  %v3430_v62 = vld [vmem:[%s4094_s8 + $0xa4] ss:$8 sps:$4 sm:$0xff]  }
 0x12b   : > { %1206 = vmatprep.mubr.bf16.mxu1 %v4213_v2  ;;  %v3436_v2 = vld [vmem:[%s4094_s8 + $0xc4] ss:$8 sps:$4 sm:$0xff]  }
 0x132   : > { %1207 = vmatmul.mubr.bf16.gmra.mrb[44].mxu1 %v4223_v6  ;;  %v3442_v6 = vld [vmem:[%s4094_s8 + $0xe4] ss:$8 sps:$4 sm:$0xff]  }
 0x133   : > { %1216 = vmatprep.mubr.bf16.mxu1 %v4229_v10 }
 0x13a   : > { %1217 = vmatmul.mubr.bf16.gmra.mrb[48].mxu1 %v4239_v14 }
 0x13b   : > { %1226 = vmatprep.mubr.bf16.mxu1 %v4245_v18 }
 0x142   : > { %1227 = vmatmul.mubr.bf16.gmra.mrb[52].mxu1 %v3375_v22 }
 0x143   : > { %1236 = vmatprep.mubr.bf16.mxu1 %v3383_v28 }
 0x14a   : > { %1237 = vmatmul.mubr.bf16.gmra.mrb[56].mxu1 %v3387_v32 }
 0x14b   : > { %1246 = vmatprep.mubr.bf16.mxu1 %v3395_v36 }
 0x152   : > { %1247 = vmatmul.mubr.bf16.gmra.mrb[60].mxu1 %v3397_v40 }
 0x153   : > { %1256 = vmatprep.mubr.bf16.mxu1 %v4147_v23  ;;  %v3416_v23 = vld [vmem:[%s4094_s8 + $0x60] ss:$8 sps:$4 sm:$0xff]  }
 0x154   : > { %2150 = vmatpush1.bf16.msra.mxu0 %v3416_v23 }
 0x15a   : > { %1257 = vmatmul.mubr.bf16.gmra.mrb[64].mxu1 %v4172_v44  ;;  %v3421_v44 = vld [vmem:[%s4094_s8 + $0x74] ss:$8 sps:$4 sm:$0xff]  }
 0x15b   : > { %1266 = vmatprep.mubr.bf16.mxu1 %v4179_v49  ;;  %v3419_v49 = vld [vmem:[%s4094_s8 + $0x70] ss:$8 sps:$4 sm:$0xff]   ;;  %2151 = vmatprep.subr.bf16.mxu0 %v3421_v44 }
 0x15c   : > { %2152 = vmatpush1.bf16.msra.mxu0 %v3419_v49 }
 0x162   : > { %1267 = vmatmul.mubr.bf16.gmra.mrb[68].mxu1 %v4188_v53  ;;  %v3424_v53 = vld [vmem:[%s4094_s8 + $0x84] ss:$8 sps:$4 sm:$0xff]  }
 0x163   : > { %1276 = vmatprep.mubr.bf16.mxu1 %v4194_v56  ;;  %v3422_v56 = vld [vmem:[%s4094_s8 + $0x80] ss:$8 sps:$4 sm:$0xff]   ;;  %2153 = vmatprep.subr.bf16.mxu0 %v3424_v53 }
 0x164   : > { %2154 = vmatpush1.bf16.msra.mxu0 %v3422_v56 }
 0x165   : > { %2155 = vmatprep.subr.bf16.mxu0 %v3427_v60 }
 0x16a   : > { %1277 = vmatmul.mubr.bf16.gmra.mrb[72].mxu1 %v4205_v61  ;;  %v3425_v61 = vld [vmem:[%s4094_s8 + $0x90] ss:$8 sps:$4 sm:$0xff]  }
 0x16b   : > { %1286 = vmatprep.mubr.bf16.mxu1 %v4210_v0  ;;  %2156 = vmatpush1.bf16.msra.mxu0 %v3425_v61  ;;  %v3433_v0 = vld [vmem:[%s4094_s8 + $0xb4] ss:$8 sps:$4 sm:$0xff]  }
 0x16c   : > { %2157 = vmatprep.subr.bf16.mxu0 %v3430_v62 }
 0x16f   : > { %2158 = vmatpush1.bf16.msra.mxu0 %v3428_v63 }
 0x170   : > { %2159 = vmatprep.subr.bf16.mxu0 %v3433_v0 }
 0x172   : > { %1287 = vmatmul.mubr.bf16.gmra.mrb[76].mxu1 %v4221_v5  ;;  %v3437_v5 = vld [vmem:[%s4094_s8 + $0xd0] ss:$8 sps:$4 sm:$0xff]  }
 0x173   : > { %1296 = vmatprep.mubr.bf16.mxu1 %v4226_v8  ;;  %2160 = vmatpush1.bf16.msra.mxu0 %v3431_v1  ;;  %v3445_v8 = vld [vmem:[%s4094_s8 + $0xf4] ss:$8 sps:$4 sm:$0xff]  }
 0x174   : > { %2161 = vmatprep.subr.bf16.mxu0 %v3436_v2 }
 0x177   : > { %2162 = vmatpush1.bf16.msra.mxu0 %v3434_v3 }
 0x178   : > { %2163 = vmatprep.subr.bf16.mxu0 %v3439_v4 }
 0x17a   : > { %1297 = vmatmul.mubr.bf16.gmra.mrb[80].mxu1 %v4237_v13 }
 0x17b   : > { %1306 = vmatprep.mubr.bf16.mxu1 %v4242_v16  ;;  %2164 = vmatpush1.bf16.msra.mxu0 %v3437_v5 }
 0x17c   : > { %2165 = vmatprep.subr.bf16.mxu0 %v3442_v6 }
 0x17f   : > { %2166 = vmatpush1.bf16.msra.mxu0 %v3440_v7 }
 0x180   : > { %2167 = vmatprep.subr.bf16.mxu0 %v3445_v8 }
 0x182   : > { %1307 = vmatmul.mubr.bf16.gmra.mrb[84].mxu1 %v4253_v21 }
 0x183   : > { %1316 = vmatprep.mubr.bf16.mxu1 %v4256_v25  ;;  %2168 = vmatpush1.bf16.msra.mxu0 %v3443_v9 }
 0x18a   : > { %1317 = vmatmul.mubr.bf16.gmra.mrb[88].mxu1 %v4263_v31 }
 0x18b   : > { %1326 = vmatprep.mubr.bf16.mxu1 %v4266_v34 }
 0x192   : > { %1327 = vmatmul.mubr.bf16.gmra.mrb[92].mxu1 %v4273_v39 }
 0x1ad   : > { %v4338_v10 = vpop.f32.mrb[0].mxu1  ;;  %v4340_v11 = vpop.f32.mrb[0].mxu0 }
 0x1ae   : > { %4863 = vst [vmem:[#allocation13_spill] sm:$0xff] %v4338_v10  ;;  %v4342_v12 = vpop.f32.mrb[1].mxu1  ;;  %v4344_v13 = vpop.f32.mrb[1].mxu0  ;;  %v2970_v41 = vmul.f32 -1.442695, %v4340_v11 }
 0x1af   : > { %4864 = vst [vmem:[#allocation14_spill] sm:$0xff] %v4342_v12  ;;  %v4346_v14 = vpop.f32.mrb[2].mxu1  ;;  %v4348_v15 = vpop.f32.mrb[2].mxu0  ;;  %v2971_v45 = vmul.f32 -1.442695, %v4344_v13 }
 0x1b0   : > { %4865 = vst [vmem:[#allocation15_spill] sm:$0xff] %v4346_v14  ;;  %v4350_v16 = vpop.f32.mrb[3].mxu1  ;;  %v4352_v17 = vpop.f32.mrb[3].mxu0  ;;  %3446 = vpow2.f32 %v2970_v41  ;;  %v2972_v46 = vmul.f32 -1.442695, %v4348_v15 }
 0x1b1   : > { %4866 = vst [vmem:[#allocation16_spill] sm:$0xff] %v4350_v16  ;;  %v2973_v47 = vmul.f32 -1.442695, %v4352_v17  ;;  %3448 = vpow2.f32 %v2971_v45  ;;  %v3002_v44 = vmul.f32 -1.442695, %v4338_v10 }
 0x1b2   : > { %3450 = vpow2.f32 %v2972_v46  ;;  %v3003_v53 = vmul.f32 -1.442695, %v4342_v12  ;;  %v3004_v60 = vmul.f32 -1.442695, %v4346_v14  ;;  %v3005_v0 = vmul.f32 -1.442695, %v4350_v16 }
 0x1b3   : > { %3452 = vpow2.f32 %v2973_v47 }
 0x1b5   : > { %v4354_v18 = vpop.f32.mrb[4].mxu1  ;;  %v4356_v19 = vpop.f32.mrb[4].mxu0 }
 0x1b6   : > { %4867 = vst [vmem:[#allocation17_spill] sm:$0xff] %v4354_v18  ;;  %v4358_v20 = vpop.f32.mrb[5].mxu1  ;;  %v4360_v21 = vpop.f32.mrb[5].mxu0  ;;  %v2974_v51 = vmul.f32 -1.442695, %v4356_v19 }
 0x1b7   : > { %4868 = vst [vmem:[#allocation18_spill] sm:$0xff] %v4358_v20  ;;  %v4362_v22 = vpop.f32.mrb[6].mxu1  ;;  %v4364_v24 = vpop.f32.mrb[6].mxu0  ;;  %v2975_v58 = vmul.f32 -1.442695, %v4360_v21 }
 0x1b8   : > { %v4366_v25 = vpop.f32.mrb[7].mxu1  ;;  %v4368_v27 = vpop.f32.mrb[7].mxu0  ;;  %3454 = vpow2.f32 %v2974_v51  ;;  %v2976_v49 = vmul.f32 -1.442695, %v4364_v24  ;;  %v3006_v2 = vmul.f32 -1.442695, %v4354_v18 }
 0x1b9   : > { %3456 = vpow2.f32 %v2975_v58  ;;  %v2977_v56 = vmul.f32 -1.442695, %v4368_v27 }
 0x1ba   : > { %3458 = vpow2.f32 %v3002_v44  ;;  %v3447_v63 = vpop.eup %3446 }
 0x1bb   : > { %3460 = vpow2.f32 %v2976_v49  ;;  %v3449_v5 = vpop.eup %3448  ;;  %v1529_v8 = vadd.f32 1.0, %v3447_v63 }
 0x1bc   : > { %3462 = vpow2.f32 %v3003_v53  ;;  %v3451_v41 = vpop.eup %3450  ;;  %v1530_v51 = vadd.f32 1.0, %v3449_v5 }
 0x1bd   : > { %v4370_v28 = vpop.f32.mrb[8].mxu1  ;;  %v4372_v29 = vpop.f32.mrb[8].mxu0  ;;  %3464 = vpow2.f32 %v2977_v56  ;;  %v1531_v49 = vadd.f32 1.0, %v3451_v41 }
 0x1be   : > { %v4374_v30 = vpop.f32.mrb[9].mxu1  ;;  %v4378_v32 = vpop.f32.mrb[9].mxu0  ;;  %v2978_v6 = vmul.f32 -1.442695, %v4372_v29  ;;  %3466 = vpow2.f32 %v3004_v60 }
 0x1bf   : > { %v4376_v31 = vpop.f32.mrb[10].mxu1  ;;  %v4382_v34 = vpop.f32.mrb[10].mxu0  ;;  %3468 = vpow2.f32 %v3005_v0  ;;  %v2979_v45 = vmul.f32 -1.442695, %v4378_v32 }
 0x1c0   : > { %v4380_v33 = vpop.f32.mrb[11].mxu1  ;;  %v4384_v35 = vpop.f32.mrb[11].mxu0  ;;  %3470 = vpow2.f32 %v3006_v2  ;;  %v2980_v44 = vmul.f32 -1.442695, %v4382_v34 }
 0x1c1   : > { %v3453_v47 = vpop.eup %3452  ;;  %3472 = vpow2.f32 %v2978_v6 }
 0x1c2   : > { %v3455_v58 = vpop.eup %3454  ;;  %3474 = vrcp.f32 %v1529_v8  ;;  %v1532_v63 = vadd.f32 1.0, %v3453_v47  ;;  %v2981_v8 = vmul.f32 -1.442695, %v4384_v35 }
 0x1c3   : > { %v3457_v60 = vpop.eup %3456  ;;  %3476 = vpow2.f32 %v2979_v45  ;;  %v1533_v2 = vadd.f32 1.0, %v3455_v58 }
 0x1c4   : > { %3478 = vrcp.f32 %v1530_v51  ;;  %v1534_v45 = vadd.f32 1.0, %v3457_v60 }
 0x1c5   : > { %v4386_v36 = vpop.f32.mrb[12].mxu1  ;;  %v4388_v37 = vpop.f32.mrb[12].mxu0  ;;  %3480 = vpow2.f32 %v2980_v44 }
 0x1c6   : > { %v4390_v38 = vpop.f32.mrb[13].mxu1  ;;  %v4394_v40 = vpop.f32.mrb[13].mxu0  ;;  %3482 = vrcp.f32 %v1531_v49  ;;  %v2982_v51 = vmul.f32 -1.442695, %v4388_v37 }
 0x1c7   : > { %v4392_v39 = vpop.f32.mrb[14].mxu1  ;;  %v4399_v43 = vpop.f32.mrb[14].mxu0  ;;  %3484 = vrcp.f32 %v1532_v63 }
 0x1c8   : > { %v4397_v42 = vpop.f32.mrb[15].mxu1  ;;  %v4401_v26 = vpop.f32.mrb[15].mxu0  ;;  %3486 = vrcp.f32 %v1533_v2  ;;  %v2984_v18 = vmul.f32 -1.442695, %v4399_v43 }
 0x1c9   : > { %4869 = vst [vmem:[#allocation19_spill] sm:$0xff] %v4397_v42  ;;  %3488 = vpow2.f32 %v2981_v8  ;;  %v3007_v8 = vmul.f32 -1.442695, %v4358_v20 }
 0x1cd   : > { %v4406_v48 = vpop.f32.mrb[16].mxu1  ;;  %v4408_v50 = vpop.f32.mrb[16].mxu0 }
 0x1ce   : > { %4870 = vst [vmem:[#allocation20_spill] sm:$0xff] %v4406_v48  ;;  %v4411_v52 = vpop.f32.mrb[17].mxu1  ;;  %v4413_v54 = vpop.f32.mrb[17].mxu0  ;;  %v2986_v20 = vmul.f32 -1.442695, %v4408_v50 }
 0x1cf   : > { %4871 = vst [vmem:[#allocation21_spill] sm:$0xff] %v4411_v52  ;;  %v4415_v55 = vpop.f32.mrb[18].mxu1  ;;  %v4417_v57 = vpop.f32.mrb[18].mxu0 }
 0x1d0   : > { %4872 = vst [vmem:[#allocation22_spill] sm:$0xff] %v4415_v55  ;;  %v4420_v59 = vpop.f32.mrb[19].mxu1  ;;  %v4422_v23 = vpop.f32.mrb[19].mxu0 }
 0x1d1   : > { %4873 = vst [vmem:[#allocation23_spill] sm:$0xff] %v4420_v59 }
 0x1d5   : > { %v4429_v61 = vpop.f32.mrb[20].mxu1  ;;  %v4431_v62 = vpop.f32.mrb[20].mxu0 }
 0x1d6   : > { %4874 = vst [vmem:[#allocation24_spill] sm:$0xff] %v4429_v61  ;;  %v4434_v1 = vpop.f32.mrb[21].mxu1  ;;  %v4439_v4 = vpop.f32.mrb[21].mxu0 }
 0x1d7   : > { %4875 = vst [vmem:[#allocation25_spill] sm:$0xff] %v4434_v1  ;;  %v4437_v3 = vpop.f32.mrb[22].mxu1  ;;  %v4444_v9 = vpop.f32.mrb[22].mxu0 }
 0x1d8   : > { %4876 = vst [vmem:[#allocation26_spill] sm:$0xff] %v4437_v3  ;;  %v4442_v7 = vpop.f32.mrb[23].mxu1  ;;  %v4447_v46 = vpop.f32.mrb[23].mxu0 }
 0x1d9   : > { %4877 = vst [vmem:[#allocation27_spill] sm:$0xff] %v4442_v7  ;;  %v4456_v7 = vpop.eup %3458  ;;  %3490 = vrcp.f32 %v1534_v45 }
 0x1da   : > { %v3461_v3 = vpop.eup %3460  ;;  %3492 = vpow2.f32 %v2982_v51 }
 0x1db   : > { %v1535_v44 = vadd.f32 1.0, %v3461_v3 }
 0x1dd   : > { %v4450_v53 = vpop.f32.mrb[24].mxu1  ;;  %v4452_v56 = vpop.f32.mrb[24].mxu0 }
 0x1de   : > { %4878 = vst [vmem:[#allocation28_spill] sm:$0xff] %v4450_v53  ;;  %v4454_v0 = vpop.f32.mrb[25].mxu1  ;;  %v4460_v6 = vpop.f32.mrb[25].mxu0 }
 0x1df   : > { %4879 = vst [vmem:[#allocation29_spill] sm:$0xff] %v4454_v0  ;;  %v4458_v5 = vpop.f32.mrb[26].mxu1  ;;  %v4465_v53 = vpop.eup %3462  ;;  %3494 = vrcp.f32 %v1535_v44 }
 0x1e0   : > { %4880 = vst [vmem:[#allocation30_spill] sm:$0xff] %v4458_v5  ;;  %v4463_v41 = vpop.f32.mrb[27].mxu1  ;;  %v4467_v47 = vpop.f32.mrb[26].mxu0 }
 0x1e1   : > { %4881 = vst [vmem:[#allocation31_spill] sm:$0xff] %v4463_v41  ;;  %v3465_v0 = vpop.eup %3464  ;;  %v4470_v58 = vpop.f32.mrb[27].mxu0  ;;  %v2983_v41 = vmul.f32 -1.442695, %v4394_v40 }
 0x1e2   : > { %4882 = vst [vmem:[#allocation32_spill] sm:$0xff] %v4470_v58  ;;  %v4472_v5 = vpop.eup %3466  ;;  %v1536_v49 = vadd.f32 1.0, %v3465_v0 }
 0x1e3   : > { %v4474_v1 = vpop.eup %3468  ;;  %3496 = vpow2.f32 %v2983_v41  ;;  %v2987_v41 = vmul.f32 -1.442695, %v4413_v54 }
 0x1e4   : > { %v4477_v61 = vpop.eup %3470  ;;  %3498 = vrcp.f32 %v1536_v49 }
 0x1e5   : > { %v4479_v60 = vpop.f32.mrb[28].mxu1  ;;  %v4481_v63 = vpop.f32.mrb[28].mxu0  ;;  %3500 = vpow2.f32 %v2984_v18 }
 0x1e6   : > { %4883 = vst [vmem:[#allocation33_spill] sm:$0xff] %v4479_v60  ;;  %4884 = vst [vmem:[#allocation34_spill] sm:$0xff] %v4481_v63  ;;  %v3473_v59 = vpop.eup %3472  ;;  %v4484_v16 = vpop.f32.mrb[29].mxu1  ;;  %v2985_v60 = vmul.f32 -1.442695, %v4401_v26  ;;  %3502 = vpow2.f32 %v3007_v8 }
 0x1e7   : > { %4885 = vst [vmem:[#allocation35_spill] sm:$0xff] %v4484_v16  ;;  %v4486_v3 = vpop.f32.mrb[29].mxu0  ;;  %v3475_v2 = vpop.eup %3474  ;;  %v1537_v16 = vadd.f32 1.0, %v3473_v59 }
 0x1e8   : > { %4886 = vst [vmem:[#allocation36_spill] sm:$0xff] %v4486_v3  ;;  %v4489_v14 = vpop.f32.mrb[30].mxu1  ;;  %v4491_v45 = vpop.f32.mrb[30].mxu0  ;;  %v1721_v48 = vmul.f32 %v3475_v2, %v4340_v11  ;;  %3504 = vpow2.f32 %v2985_v60 }
 0x1e9   : > { %4887 = vst [vmem:[#allocation37_spill] sm:$0xff] %v4489_v14  ;;  %4888 = vst [vmem:[#allocation38_spill] sm:$0xff] %v4491_v45  ;;  %v3477_v0 = vpop.eup %3476  ;;  %v4494_v12 = vpop.f32.mrb[31].mxu1  ;;  %3506 = vrcp.f32 %v1537_v16  ;;  %v3008_v45 = vmul.f32 -1.442695, %v4362_v22 }
 0x1ea   : > { %4889 = vst [vmem:[#allocation39_spill] sm:$0xff] %v4494_v12  ;;  %v4496_v51 = vpop.f32.mrb[31].mxu0  ;;  %v3479_v10 = vpop.eup %3478  ;;  %v1538_v14 = vadd.f32 1.0, %v3477_v0  ;;  %3508 = vpow2.f32 %v2986_v20 }
 0x1eb   : > { %4890 = vst [vmem:[#allocation40_spill] sm:$0xff] %v4496_v51  ;;  %v3481_v55 = vpop.eup %3480  ;;  %v1722_v12 = vmul.f32 %v3479_v10, %v4344_v13  ;;  %v3009_v10 = vmul.f32 -1.442695, %v4366_v25 }
 0x1ec   : > { %v3483_v44 = vpop.eup %3482  ;;  %v1539_v51 = vadd.f32 1.0, %v3481_v55  ;;  %3510 = vrcp.f32 %v1538_v14 }
 0x1ed   : > { %v3485_v52 = vpop.eup %3484  ;;  %v1178_v49 = vpop.f32.mrb[32].mxu1  ;;  %v1723_v18 = vmul.f32 %v3483_v44, %v4348_v15  ;;  %3512 = vpow2.f32 %v2987_v41  ;;  %v1561_v15 = vadd.f32 1.0, %v4456_v7  ;;  %v1562_v44 = vadd.f32 1.0, %v4465_v53 }
 0x1ee   : > { %v3487_v42 = vpop.eup %3486  ;;  %v1785_v8 = vmul.f32 %v1721_v48, %v1178_v49  ;;  %v1180_v0 = vpop.f32.mrb[33].mxu1  ;;  %v1724_v11 = vmul.f32 %v3485_v52, %v4352_v17  ;;  %3514 = vrcp.f32 %v1539_v51  ;;  %v1563_v53 = vadd.f32 1.0, %v4472_v5 }
 0x1ef   : > { %v3489_v59 = vpop.eup %3488  ;;  %v1786_v2 = vmul.f32 %v1722_v12, %v1180_v0  ;;  %v1182_v63 = vpop.f32.mrb[34].mxu1  ;;  %v1725_v41 = vmul.f32 %v3487_v42, %v4356_v19  ;;  %v1565_v5 = vadd.f32 1.0, %v4477_v61 }
 0x1f0   : > { %v3491_v3 = vpop.eup %3490  ;;  %v1540_v60 = vadd.f32 1.0, %v3489_v59  ;;  %v1787_v13 = vmul.f32 %v1723_v18, %v1182_v63  ;;  %v1184_v16 = vpop.f32.mrb[35].mxu1 }
 0x1f1   : > { %v3493_v58 = vpop.eup %3492  ;;  %v1788_v20 = vmul.f32 %v1724_v11, %v1184_v16  ;;  %v1726_v7 = vmul.f32 %v3491_v3, %v4360_v21  ;;  %v1564_v3 = vadd.f32 1.0, %v4474_v1 }
 0x1f2   : > { %v3495_v55 = vpop.eup %3494  ;;  %3516 = vrcp.f32 %v1540_v60  ;;  %v1913_v17 = vpack.c.bf16 %v1787_v13, %v1785_v8  ;;  %v1541_v12 = vadd.f32 1.0, %v3493_v58 }
 0x1f3   : > { %v3497_v48 = vpop.eup %3496  ;;  %3518 = vpow2.f32 %v3008_v45  ;;  %v1914_v52 = vpack.c.bf16 %v1788_v20, %v1786_v2  ;;  %v1727_v45 = vmul.f32 %v3495_v55, %v4364_v24 }
 0x1f4   : > { %v3499_v14 = vpop.eup %3498  ;;  %3520 = vpow2.f32 %v3009_v10  ;;  %v1542_v63 = vadd.f32 1.0, %v3497_v48  ;;  %v2988_v48 = vmul.f32 -1.442695, %v4417_v57 }
 0x1f5   : > { %v3501_v49 = vpop.eup %3500  ;;  %3522 = vrcp.f32 %v1561_v15  ;;  %v1188_v18 = vpop.f32.mrb[36].mxu1  ;;  %2169 = vmatprep.mubr.bf16.mxu0 %v1914_v52  ;;  %v1728_v19 = vmul.f32 %v3499_v14, %v4368_v27  ;;  %v2989_v52 = vmul.f32 -1.442695, %v4422_v23 }
 0x1f6   : > { %v3503_v59 = vpop.eup %3502  ;;  %v1543_v51 = vadd.f32 1.0, %v3501_v49  ;;  %3524 = vrcp.f32 %v1562_v44  ;;  %v1789_v58 = vmul.f32 %v1725_v41, %v1188_v18  ;;  %v1190_v8 = vpop.f32.mrb[37].mxu1  ;;  %2170 = vmatmul.mubr.bf16.vlgmr.msra.gmra.mrb[32].mxu0 %v1913_v17 }
 0x1f7   : > { %v3505_v0 = vpop.eup %3504  ;;  %3526 = vrcp.f32 %v1541_v12  ;;  %v1790_v60 = vmul.f32 %v1726_v7, %v1190_v8  ;;  %v1192_v2 = vpop.f32.mrb[38].mxu1  ;;  %v3010_v8 = vmul.f32 -1.442695, %v4370_v28 }
 0x1f8   : > { %v3507_v11 = vpop.eup %3506  ;;  %v1544_v42 = vadd.f32 1.0, %v3505_v0  ;;  %3528 = vrcp.f32 %v1542_v63  ;;  %v1791_v10 = vmul.f32 %v1727_v45, %v1192_v2  ;;  %v1194_v13 = vpop.f32.mrb[39].mxu1  ;;  %v1566_v63 = vadd.f32 1.0, %v3503_v59 }
 0x1f9   : > { %v3509_v21 = vpop.eup %3508  ;;  %3530 = vrcp.f32 %v1543_v51  ;;  %v1792_v24 = vmul.f32 %v1728_v19, %v1194_v13  ;;  %v1729_v1 = vmul.f32 %v3507_v11, %v4372_v29  ;;  %v2991_v19 = vmul.f32 -1.442695, %v4439_v4 }
 0x1fa   : > { %v3511_v16 = vpop.eup %3510  ;;  %3532 = vrcp.f32 %v1544_v42  ;;  %v1545_v15 = vadd.f32 1.0, %v3509_v21  ;;  %v1915_v20 = vpack.c.bf16 %v1791_v10, %v1789_v58 }
 0x1fb   : > { %v3513_v55 = vpop.eup %3512  ;;  %3534 = vrcp.f32 %v1563_v53  ;;  %v1916_v44 = vpack.c.bf16 %v1792_v24, %v1790_v60  ;;  %v1730_v61 = vmul.f32 %v3511_v16, %v4378_v32  ;;  %v2990_v53 = vmul.f32 -1.442695, %v4431_v62 }
 0x1fc   : > { %v3515_v27 = vpop.eup %3514  ;;  %3536 = vrcp.f32 %v1564_v3  ;;  %v1546_v14 = vadd.f32 1.0, %v3513_v55  ;;  %v2992_v3 = vmul.f32 -1.442695, %v4444_v9  ;;  %v3012_v16 = vmul.f32 -1.442695, %v4376_v31 }
 0x1fd   : > { %v3517_v17 = vpop.eup %3516  ;;  %3538 = vrcp.f32 %v1565_v5  ;;  %v1198_v49 = vpop.f32.mrb[40].mxu1  ;;  %2179 = vmatprep.mubr.bf16.mxu0 %v1916_v44  ;;  %v1731_v7 = vmul.f32 %v3515_v27, %v4382_v34 }
 0x1fe   : > { %v3519_v12 = vpop.eup %3518  ;;  %3540 = vrcp.f32 %v1545_v15  ;;  %v1793_v51 = vmul.f32 %v1729_v1, %v1198_v49  ;;  %v1200_v18 = vpop.f32.mrb[41].mxu1  ;;  %2180 = vmatmul.mubr.bf16.gmra.mrb[36].mxu0 %v1915_v20  ;;  %v1732_v29 = vmul.f32 %v3517_v17, %v4384_v35  ;;  %v3011_v35 = vmul.f32 -1.442695, %v4374_v30 }
 0x1ff   : > { %v3521_v41 = vpop.eup %3520  ;;  %3542 = vpow2.f32 %v2988_v48  ;;  %v1794_v32 = vmul.f32 %v1730_v61, %v1200_v18  ;;  %v1202_v45 = vpop.f32.mrb[42].mxu1  ;;  %v2993_v15 = vmul.f32 -1.442695, %v4447_v46  ;;  %v1567_v48 = vadd.f32 1.0, %v3519_v12 }
 0x200   : > { %v4520_v0 = vpop.eup %3522  ;;  %3544 = vrcp.f32 %v1546_v14  ;;  %v1795_v59 = vmul.f32 %v1731_v7, %v1202_v45  ;;  %v1204_v34 = vpop.f32.mrb[43].mxu1  ;;  %v3013_v12 = vmul.f32 -1.442695, %v4380_v33 }
 0x201   : > { %v4524_v58 = vpop.eup %3524  ;;  %3546 = vpow2.f32 %v2989_v52  ;;  %v1796_v42 = vmul.f32 %v1732_v29, %v1204_v34 }
 0x202   : > { %v3527_v11 = vpop.eup %3526  ;;  %3548 = vrcp.f32 %v1566_v63  ;;  %v1917_v2 = vpack.c.bf16 %v1795_v59, %v1793_v51 }
 0x203   : > { %v3529_v60 = vpop.eup %3528  ;;  %3550 = vpow2.f32 %v2990_v53  ;;  %v1918_v10 = vpack.c.bf16 %v1796_v42, %v1794_v32  ;;  %v1733_v5 = vmul.f32 %v3527_v11, %v4388_v37  ;;  %v1568_v37 = vadd.f32 1.0, %v3521_v41 }
 0x204   : > { %v3531_v21 = vpop.eup %3530  ;;  %3552 = vpow2.f32 %v3010_v8  ;;  %v1734_v55 = vmul.f32 %v3529_v60, %v4394_v40  ;;  %v3015_v11 = vmul.f32 -1.442695, %v4390_v38 }
 0x205   : > { %v3533_v13 = vpop.eup %3532  ;;  %3554 = vpow2.f32 %v2991_v19  ;;  %v1208_v20 = vpop.f32.mrb[44].mxu1  ;;  %2189 = vmatprep.mubr.bf16.mxu0 %v1918_v10  ;;  %v1735_v44 = vmul.f32 %v3531_v21, %v4399_v43 }
 0x206   : > { %v4532_v24 = vpop.eup %3534  ;;  %3556 = vpow2.f32 %v3011_v35  ;;  %v1797_v17 = vmul.f32 %v1733_v5, %v1208_v20  ;;  %v1210_v1 = vpop.f32.mrb[45].mxu1  ;;  %2190 = vmatmul.mubr.bf16.gmra.mrb[40].mxu0 %v1917_v2  ;;  %v1736_v61 = vmul.f32 %v3533_v13, %v4401_v26  ;;  %v3014_v26 = vmul.f32 -1.442695, %v4386_v36 }
 0x207   : > { %v4536_v27 = vpop.eup %3536  ;;  %3558 = vpow2.f32 %v2992_v3  ;;  %v1798_v40 = vmul.f32 %v1734_v55, %v1210_v1  ;;  %v1212_v52 = vpop.f32.mrb[46].mxu1 }
 0x208   : > { %v4539_v14 = vpop.eup %3538  ;;  %3560 = vpow2.f32 %v3012_v16  ;;  %v1799_v63 = vmul.f32 %v1735_v44, %v1212_v52  ;;  %v1214_v7 = vpop.f32.mrb[47].mxu1 }
 0x209   : > { %v3541_v49 = vpop.eup %3540  ;;  %3562 = vpow2.f32 %v2993_v15  ;;  %v1800_v43 = vmul.f32 %v1736_v61, %v1214_v7  ;;  %v2994_v61 = vmul.f32 -1.442695, %v4452_v56  ;;  %v2995_v7 = vmul.f32 -1.442695, %v4460_v6 }
 0x20a   : > { %v3543_v51 = vpop.eup %3542  ;;  %3564 = vrcp.f32 %v1567_v48  ;;  %v1919_v53 = vpack.c.bf16 %v1799_v63, %v1797_v17  ;;  %v1737_v8 = vmul.f32 %v3541_v49, %v4408_v50  ;;  %v3016_v50 = vmul.f32 -1.442695, %v4392_v39 }
 0x20b   : > { %v3545_v18 = vpop.eup %3544  ;;  %v1547_v29 = vadd.f32 1.0, %v3543_v51  ;;  %3566 = vrcp.f32 %v1568_v37  ;;  %v1920_v41 = vpack.c.bf16 %v1800_v43, %v1798_v40 }
 0x20c   : > { %v3547_v32 = vpop.eup %3546  ;;  %v1738_v19 = vmul.f32 %v3545_v18, %v4413_v54 }
 0x20d   : > { %v4544_v45 = vpop.eup %3548  ;;  %3568 = vrcp.f32 %v1547_v29  ;;  %v1548_v59 = vadd.f32 1.0, %v3547_v32  ;;  %v1218_v42 = vpop.f32.mrb[48].mxu1  ;;  %2199 = vmatprep.mubr.bf16.mxu0 %v1920_v41 }
 0x20e   : > { %v3551_v34 = vpop.eup %3550  ;;  %3570 = vpow2.f32 %v3013_v12  ;;  %v4549_v2 = vmul.f32 %v1737_v8, %v1218_v42  ;;  %v1220_v21 = vpop.f32.mrb[49].mxu1  ;;  %2200 = vmatmul.mubr.bf16.gmra.mrb[44].mxu0 %v1919_v53  ;;  %v2996_v53 = vmul.f32 -1.442695, %v4467_v47 }
 0x20f   : > { %v3553_v60 = vpop.eup %3552  ;;  %3572 = vrcp.f32 %v1548_v59  ;;  %v1549_v35 = vadd.f32 1.0, %v3551_v34  ;;  %v4552_v10 = vmul.f32 %v1738_v19, %v1220_v21  ;;  %v1222_v13 = vpop.f32.mrb[50].mxu1  ;;  %v4891_v34 = vld [vmem:[#allocation32_spill] sm:$0xff] }
 0x210   : > { %v3555_v3 = vpop.eup %3554  ;;  %3574 = vpow2.f32 %v3014_v26  ;;  %v1224_v54 = vpop.f32.mrb[51].mxu1  ;;  %v1569_v15 = vadd.f32 1.0, %v3553_v60 }
 0x211   : > { %v3557_v16 = vpop.eup %3556  ;;  %3576 = vrcp.f32 %v1549_v35  ;;  %v1550_v5 = vadd.f32 1.0, %v3555_v3  ;;  %v4892_v3 = vld [vmem:[#allocation34_spill] sm:$0xff] }
 0x212   : > { %v3559_v55 = vpop.eup %3558  ;;  %3578 = vpow2.f32 %v3015_v11  ;;  %v1570_v17 = vadd.f32 1.0, %v3557_v16  ;;  %v2997_v11 = vmul.f32 -1.442695, %v4891_v34 }
 0x213   : > { %v3561_v20 = vpop.eup %3560  ;;  %3580 = vrcp.f32 %v1550_v5  ;;  %v1551_v48 = vadd.f32 1.0, %v3559_v55 }
 0x214   : > { %v3563_v44 = vpop.eup %3562  ;;  %3582 = vpow2.f32 %v3016_v50  ;;  %v1571_v52 = vadd.f32 1.0, %v3561_v20  ;;  %v2998_v50 = vmul.f32 -1.442695, %v4892_v3 }
 0x215   : > { %v4554_v1 = vpop.eup %3564  ;;  %3584 = vrcp.f32 %v1551_v48  ;;  %v1552_v37 = vadd.f32 1.0, %v3563_v44  ;;  %v1228_v49 = vpop.f32.mrb[52].mxu1 }
 0x216   : > { %v4557_v40 = vpop.eup %3566  ;;  %3586 = vrcp.f32 %v1569_v15  ;;  %v1230_v51 = vpop.f32.mrb[53].mxu1 }
 0x217   : > { %v3569_v63 = vpop.eup %3568  ;;  %3588 = vrcp.f32 %v1552_v37  ;;  %v1232_v18 = vpop.f32.mrb[54].mxu1  ;;  %v4895_v37 = vld [vmem:[#allocation40_spill] sm:$0xff] }
 0x218   : > { %v3571_v12 = vpop.eup %3570  ;;  %3590 = vrcp.f32 %v1570_v17  ;;  %v1739_v43 = vmul.f32 %v3569_v63, %v4417_v57  ;;  %v1234_v32 = vpop.f32.mrb[55].mxu1 }
 0x219   : > { %v3573_v29 = vpop.eup %3572  ;;  %3592 = vpow2.f32 %v2994_v61  ;;  %v1572_v42 = vadd.f32 1.0, %v3571_v12 }
 0x21a   : > { %v3575_v26 = vpop.eup %3574  ;;  %3594 = vrcp.f32 %v1571_v52  ;;  %v1740_v41 = vmul.f32 %v3573_v29, %v4422_v23  ;;  %v1803_v8 = vmul.f32 %v1739_v43, %v1222_v13  ;;  %v4893_v13 = vld [vmem:[#allocation36_spill] sm:$0xff] }
 0x21b   : > { %v3577_v59 = vpop.eup %3576  ;;  %3596 = vpow2.f32 %v2995_v7  ;;  %v2999_v5 = vmul.f32 -1.442695, %v4893_v13 }
 0x21c   : > { %v4564_v19 = vpop.eup %3578  ;;  %v1741_v57 = vmul.f32 %v3577_v59, %v4431_v62  ;;  %v1921_v60 = vpack.c.bf16 %v1803_v8, %v4549_v2  ;;  %v1804_v35 = vmul.f32 %v1740_v41, %v1224_v54  ;;  %3598 = vpow2.f32 %v2996_v53  ;;  %v4894_v62 = vld [vmem:[#allocation38_spill] sm:$0xff] }
 0x21d   : > { %v3581_v21 = vpop.eup %3580  ;;  %v4574_v20 = vpop.f32.mrb[56].mxu1  ;;  %3600 = vpow2.f32 %v2997_v11  ;;  %v3000_v2 = vmul.f32 -1.442695, %v4894_v62  ;;  %v4897_v11 = vld [vmem:[#allocation20_spill] sm:$0xff] }
 0x21e   : > { %v4569_v16 = vpop.eup %3582  ;;  %v1742_v23 = vmul.f32 %v3581_v21, %v4439_v4  ;;  %v1922_v55 = vpack.c.bf16 %v1804_v35, %v4552_v10  ;;  %v1805_v15 = vmul.f32 %v1741_v57, %v1228_v49  ;;  %v4577_v54 = vpop.f32.mrb[57].mxu1  ;;  %3602 = vrcp.f32 %v1572_v42  ;;  %v4898_v35 = vld [vmem:[#allocation21_spill] sm:$0xff] }
 0x21f   : > { %v3585_v48 = vpop.eup %3584  ;;  %v3001_v4 = vmul.f32 -1.442695, %v4895_v37  ;;  %v4583_v52 = vpop.f32.mrb[58].mxu1  ;;  %v1573_v49 = vadd.f32 1.0, %v3575_v26  ;;  %3604 = vpow2.f32 %v2998_v50  ;;  %v3018_v42 = vmul.f32 -1.442695, %v4897_v11 }
 0x220   : > { %v4579_v44 = vpop.eup %3586  ;;  %v1743_v17 = vmul.f32 %v3585_v48, %v4444_v9  ;;  %2209 = vmatprep.mubr.bf16.mxu0 %v1922_v55  ;;  %v1806_v61 = vmul.f32 %v1742_v23, %v1230_v51  ;;  %v4585_v63 = vpop.f32.mrb[59].mxu1  ;;  %3606 = vpow2.f32 %v2999_v5  ;;  %v4896_v9 = vld [vmem:[#allocation19_spill] sm:$0xff]  ;;  %v3019_v21 = vmul.f32 -1.442695, %v4898_v35  ;;  %v4899_v55 = vld [vmem:[#allocation22_spill] sm:$0xff] }
 0x221   : > { %v3589_v10 = vpop.eup %3588  ;;  %2210 = vmatmul.mubr.bf16.gmra.mrb[48].mxu0 %v1921_v60  ;;  %v3017_v53 = vmul.f32 -1.442695, %v4896_v9  ;;  %3608 = vpow2.f32 %v3000_v2 }
 0x222   : > { %v4587_v7 = vpop.eup %3590  ;;  %v1744_v12 = vmul.f32 %v3589_v10, %v4447_v46  ;;  %v1807_v43 = vmul.f32 %v1743_v17, %v1232_v18  ;;  %3610 = vpow2.f32 %v3001_v4 }
 0x223   : > { %v3593_v29 = vpop.eup %3592  ;;  %3612 = vrcp.f32 %v1573_v49  ;;  %v4901_v49 = vld [vmem:[#allocation14_spill] sm:$0xff] }
 0x224   : > { %v4591_v41 = vpop.eup %3594  ;;  %v1553_v51 = vadd.f32 1.0, %v3593_v29  ;;  %v1923_v8 = vpack.c.bf16 %v1807_v43, %v1805_v15  ;;  %v1808_v26 = vmul.f32 %v1744_v12, %v1234_v32  ;;  %v3020_v15 = vmul.f32 -1.442695, %v4899_v55  ;;  %v4902_v29 = vld [vmem:[#allocation15_spill] sm:$0xff] }
 0x225   : > { %v3597_v59 = vpop.eup %3596  ;;  %v4594_v46 = vpop.f32.mrb[60].mxu1  ;;  %v1754_v12 = vmul.f32 %v4524_v58, %v4901_v49 }
 0x226   : > { %3614 = vrcp.f32 %v1553_v51  ;;  %v1554_v57 = vadd.f32 1.0, %v3597_v59  ;;  %v1924_v60 = vpack.c.bf16 %v1808_v26, %v1806_v61  ;;  %v3599_v18 = vpop.eup %3598  ;;  %v4597_v50 = vpop.f32.mrb[61].mxu1  ;;  %v4900_v61 = vld [vmem:[#allocation13_spill] sm:$0xff]  ;;  %v4903_v51 = vld [vmem:[#allocation16_spill] sm:$0xff] }
 0x227   : > { %3616 = vpow2.f32 %v3017_v53  ;;  %v1555_v23 = vadd.f32 1.0, %v3599_v18  ;;  %v4599_v5 = vpop.f32.mrb[62].mxu1  ;;  %v3601_v32 = vpop.eup %3600  ;;  %v1753_v10 = vmul.f32 %v4520_v0, %v4900_v61  ;;  %v1755_v53 = vmul.f32 %v4532_v24, %v4902_v29  ;;  %v4906_v24 = vld [vmem:[#allocation23_spill] sm:$0xff] }
 0x228   : > { %3618 = vrcp.f32 %v1554_v57  ;;  %2219 = vmatprep.mubr.bf16.mxu0 %v1924_v60  ;;  %v4602_v48 = vpop.f32.mrb[63].mxu1  ;;  %v4604_v2 = vpop.eup %3602  ;;  %v1556_v17 = vadd.f32 1.0, %v3601_v32  ;;  %v4905_v60 = vld [vmem:[#allocation18_spill] sm:$0xff] }
 0x229   : > { %3620 = vpow2.f32 %v3018_v42  ;;  %2220 = vmatmul.mubr.bf16.gmra.mrb[52].mxu0 %v1923_v8  ;;  %v3605_v4 = vpop.eup %3604  ;;  %v1756_v8 = vmul.f32 %v4536_v27, %v4903_v51  ;;  %v4904_v42 = vld [vmem:[#allocation17_spill] sm:$0xff]  ;;  %v4618_v0 = vmul.f32 %v4544_v45, %v4905_v60  ;;  %v4909_v51 = vld [vmem:[#allocation26_spill] sm:$0xff] }
 0x22a   : > { %3622 = vrcp.f32 %v1555_v23  ;;  %v3607_v43 = vpop.eup %3606  ;;  %v1557_v26 = vadd.f32 1.0, %v3605_v4  ;;  %v1757_v57 = vmul.f32 %v4539_v14, %v4904_v42  ;;  %v3021_v23 = vmul.f32 -1.442695, %v4906_v24  ;;  %v4907_v4 = vld [vmem:[#allocation24_spill] sm:$0xff]  ;;  %v4910_v42 = vld [vmem:[#allocation27_spill] sm:$0xff] }
 0x22b   : > { %3624 = vpow2.f32 %v3019_v21  ;;  %v3609_v59 = vpop.eup %3608  ;;  %v1558_v58 = vadd.f32 1.0, %v3607_v43  ;;  %v4622_v21 = vmul.f32 %v4554_v1, %v4362_v22  ;;  %v3022_v14 = vmul.f32 -1.442695, %v4907_v4  ;;  %v4908_v43 = vld [vmem:[#allocation25_spill] sm:$0xff] }
 0x22c   : > { %3626 = vrcp.f32 %v1556_v17  ;;  %v3611_v18 = vpop.eup %3610  ;;  %v1559_v27 = vadd.f32 1.0, %v3609_v59  ;;  %v3023_v29 = vmul.f32 -1.442695, %v4908_v43  ;;  %v3024_v22 = vmul.f32 -1.442695, %v4909_v51 }
 0x22d   : > { %3628 = vpow2.f32 %v3020_v15  ;;  %v1258_v32 = vpop.f32.mrb[64].mxu1  ;;  %v4625_v17 = vpop.eup %3612  ;;  %v1560_v61 = vadd.f32 1.0, %v3611_v18  ;;  %v3025_v60 = vmul.f32 -1.442695, %v4910_v42  ;;  %v1575_v43 = vadd.f32 1.0, %v4569_v16 }
 0x22e   : > { %3630 = vrcp.f32 %v1557_v26  ;;  %v4628_v45 = vmul.f32 %v1753_v10, %v1258_v32  ;;  %v1260_v15 = vpop.f32.mrb[65].mxu1  ;;  %v1574_v32 = vadd.f32 1.0, %v4564_v19 }
 0x22f   : > { %3632 = vrcp.f32 %v1558_v58  ;;  %v4632_v1 = vmul.f32 %v1754_v12, %v1260_v15  ;;  %v1262_v26 = vpop.f32.mrb[66].mxu1 }
 0x230   : > { %v3615_v49 = vpop.eup %3614  ;;  %3634 = vrcp.f32 %v1559_v27  ;;  %v4636_v58 = vmul.f32 %v1755_v53, %v1262_v26  ;;  %v1264_v10 = vpop.f32.mrb[67].mxu1 }
 0x231   : > { %v3617_v59 = vpop.eup %3616  ;;  %v1745_v24 = vmul.f32 %v3615_v49, %v4452_v56  ;;  %3636 = vrcp.f32 %v1560_v61  ;;  %v4640_v51 = vmul.f32 %v1756_v8, %v1264_v10  ;;  %v4911_v49 = vld [vmem:[#allocation28_spill] sm:$0xff]  ;;  %v4912_v8 = vld [vmem:[#allocation29_spill] sm:$0xff]  ;;  %v4914_v10 = vld [vmem:[#allocation31_spill] sm:$0xff] }
 0x232   : > { %v3619_v18 = vpop.eup %3618  ;;  %3638 = vpow2.f32 %v3021_v23  ;;  %v1576_v61 = vadd.f32 1.0, %v3617_v59  ;;  %v3026_v26 = vmul.f32 -1.442695, %v4911_v49  ;;  %v3027_v23 = vmul.f32 -1.442695, %v4912_v8  ;;  %v4913_v59 = vld [vmem:[#allocation30_spill] sm:$0xff] }
 0x233   : > { %v3621_v12 = vpop.eup %3620  ;;  %3640 = vpow2.f32 %v3022_v14  ;;  %v1746_v27 = vmul.f32 %v3619_v18, %v4460_v6  ;;  %v1809_v15 = vmul.f32 %v1745_v24, %v4574_v20  ;;  %v1760_v24 = vmul.f32 %v4557_v40, %v4366_v25 }
 0x234   : > { %v3623_v53 = vpop.eup %3622  ;;  %3642 = vpow2.f32 %v3023_v29  ;;  %v3028_v29 = vmul.f32 -1.442695, %v4913_v59  ;;  %v4656_v18 = vmul.f32 -1.442695, %v4914_v10 }
 0x235   : > { %v3625_v16 = vpop.eup %3624  ;;  %3644 = vpow2.f32 %v3024_v22  ;;  %v1747_v14 = vmul.f32 %v3623_v53, %v4467_v47  ;;  %v1810_v6 = vmul.f32 %v1746_v27, %v4577_v54  ;;  %v1268_v56 = vpop.f32.mrb[68].mxu1  ;;  %v1577_v53 = vadd.f32 1.0, %v3621_v12 }
 0x236   : > { %v3627_v20 = vpop.eup %3626  ;;  %3646 = vrcp.f32 %v1574_v32  ;;  %v4660_v47 = vmul.f32 %v1757_v57, %v1268_v56  ;;  %v1270_v54 = vpop.f32.mrb[69].mxu1  ;;  %v1578_v25 = vadd.f32 1.0, %v3625_v16 }
 0x237   : > { %v3629_v19 = vpop.eup %3628  ;;  %3648 = vrcp.f32 %v1575_v43  ;;  %v1748_v22 = vmul.f32 %v3627_v20, %v4891_v34  ;;  %v1811_v8 = vmul.f32 %v1747_v14, %v4583_v52  ;;  %v4663_v40 = vmul.f32 %v4618_v0, %v1270_v54  ;;  %v1272_v32 = vpop.f32.mrb[70].mxu1 }
 0x238   : > { %v3631_v27 = vpop.eup %3630  ;;  %3650 = vrcp.f32 %v1576_v61  ;;  %v4668_v34 = vmul.f32 %v4622_v21, %v1272_v32  ;;  %v1274_v52 = vpop.f32.mrb[71].mxu1  ;;  %v1579_v56 = vadd.f32 1.0, %v3629_v19 }
 0x239   : > { %v3633_v10 = vpop.eup %3632  ;;  %v1749_v59 = vmul.f32 %v3631_v27, %v4892_v3  ;;  %v1925_v49 = vpack.c.bf16 %v1811_v8, %v1809_v15  ;;  %v1812_v43 = vmul.f32 %v1748_v22, %v4585_v63  ;;  %3652 = vpow2.f32 %v3025_v60 }
 0x23a   : > { %v3635_v57 = vpop.eup %3634  ;;  %v1750_v12 = vmul.f32 %v3633_v10, %v4893_v13  ;;  %v4671_v61 = vmul.f32 %v1760_v24, %v1274_v52  ;;  %v1931_v63 = vpack.c.bf16 %v4668_v34, %v4660_v47  ;;  %3654 = vrcp.f32 %v1577_v53  ;;  %v4915_v53 = vld [vmem:[#allocation33_spill] sm:$0xff] }
 0x23b   : > { %v3637_v0 = vpop.eup %3636  ;;  %v1751_v16 = vmul.f32 %v3635_v57, %v4894_v62  ;;  %v1926_v14 = vpack.c.bf16 %v1812_v43, %v1810_v6  ;;  %v1813_v3 = vmul.f32 %v1749_v59, %v4594_v46  ;;  %v1761_v8 = vmul.f32 %v4579_v44, %v4370_v28  ;;  %v4916_v43 = vld [vmem:[#allocation35_spill] sm:$0xff] }
 0x23c   : > { %v3639_v15 = vpop.eup %3638  ;;  %v1752_v21 = vmul.f32 %v3637_v0, %v4895_v37  ;;  %v1814_v19 = vmul.f32 %v1750_v12, %v4597_v50  ;;  %v1932_v13 = vpack.c.bf16 %v4671_v61, %v4663_v40  ;;  %v1762_v62 = vmul.f32 %v4587_v7, %v4374_v30 }
 0x23d   : > { %v3641_v60 = vpop.eup %3640  ;;  %3656 = vrcp.f32 %v1578_v25  ;;  %2229 = vmatprep.mubr.bf16.mxu0 %v1926_v14  ;;  %v1815_v46 = vmul.f32 %v1751_v16, %v4599_v5  ;;  %v1763_v37 = vmul.f32 %v4591_v41, %v4376_v31  ;;  %v1764_v50 = vmul.f32 %v4604_v2, %v4380_v33  ;;  %v1278_v24 = vpop.f32.mrb[72].mxu1  ;;  %v4918_v16 = vld [vmem:[#allocation39_spill] sm:$0xff] }
 0x23e   : > { %v3643_v6 = vpop.eup %3642  ;;  %3658 = vrcp.f32 %v1579_v56  ;;  %2230 = vmatmul.mubr.bf16.gmra.mrb[56].mxu0 %v1925_v49  ;;  %v1816_v20 = vmul.f32 %v1752_v21, %v4602_v48  ;;  %v1580_v44 = vadd.f32 1.0, %v3639_v15  ;;  %v4691_v7 = vmul.f32 %v1761_v8, %v1278_v24  ;;  %v1280_v59 = vpop.f32.mrb[73].mxu1 }
 0x23f   : > { %v3645_v28 = vpop.eup %3644  ;;  %3660 = vpow2.f32 %v3026_v26  ;;  %v1927_v30 = vpack.c.bf16 %v1815_v46, %v1813_v3  ;;  %v1581_v10 = vadd.f32 1.0, %v3641_v60  ;;  %v4693_v31 = vmul.f32 %v1762_v62, %v1280_v59  ;;  %v1282_v41 = vpop.f32.mrb[74].mxu1 }
 0x240   : > { %v3647_v5 = vpop.eup %3646  ;;  %3662 = vpow2.f32 %v3027_v23  ;;  %v1928_v22 = vpack.c.bf16 %v1816_v20, %v1814_v19  ;;  %v1582_v2 = vadd.f32 1.0, %v3643_v6  ;;  %v4695_v49 = vmul.f32 %v1763_v37, %v1282_v41  ;;  %v1284_v48 = vpop.f32.mrb[75].mxu1 }
 0x241   : > { %v3649_v33 = vpop.eup %3648  ;;  %3664 = vpow2.f32 %v3028_v29  ;;  %v1583_v27 = vadd.f32 1.0, %v3645_v28  ;;  %v4698_v26 = vmul.f32 %v1764_v50, %v1284_v48  ;;  %v3030_v23 = vmul.f32 -1.442695, %v4915_v53 }
 0x242   : > { %v3651_v54 = vpop.eup %3650  ;;  %3666 = vpow2.f32 %v4656_v18  ;;  %2239 = vmatprep.mubr.bf16.mxu0 %v1928_v22  ;;  %v1933_v25 = vpack.c.bf16 %v4695_v49, %v4691_v7  ;;  %v3031_v29 = vmul.f32 -1.442695, %v4916_v43  ;;  %v1765_v57 = vmul.f32 %v4625_v17, %v4386_v36  ;;  %v4917_v18 = vld [vmem:[#allocation37_spill] sm:$0xff] }
 0x243   : > { %3668 = vrcp.f32 %v1580_v44  ;;  %v3653_v32 = vpop.eup %3652  ;;  %v1934_v52 = vpack.c.bf16 %v4698_v26, %v4693_v31  ;;  %v3032_v56 = vmul.f32 -1.442695, %v4917_v18  ;;  %v1766_v0 = vmul.f32 %v3647_v5, %v4390_v38  ;;  %v4924_v26 = vld [vmem:[#allocation28_spill] sm:$0xff] }
 0x244   : > { %3670 = vrcp.f32 %v1581_v10  ;;  %v3655_v12 = vpop.eup %3654  ;;  %v3033_v14 = vmul.f32 -1.442695, %v4918_v16  ;;  %v1767_v21 = vmul.f32 %v3649_v33, %v4392_v39  ;;  %v1584_v19 = vadd.f32 1.0, %v3653_v32  ;;  %v4921_v32 = vld [vmem:[#allocation23_spill] sm:$0xff] }
 0x245   : > { %3672 = vrcp.f32 %v1582_v2  ;;  %v1288_v3 = vpop.f32.mrb[76].mxu1  ;;  %v4919_v60 = vpack.c.bf16 %v4640_v51, %v4632_v1  ;;  %v1768_v38 = vmul.f32 %v3651_v54, %v4896_v9  ;;  %v4920_v41 = vpack.c.bf16 %v4636_v58, %v4628_v45 }
 0x246   : > { %3674 = vrcp.f32 %v1583_v27  ;;  %2240 = vmatmul.mubr.bf16.gmra.mrb[60].mxu0 %v1927_v30  ;;  %v4715_v36 = vmul.f32 %v1765_v57, %v1288_v3  ;;  %v1290_v17 = vpop.f32.mrb[77].mxu1  ;;  %v1769_v30 = vmul.f32 %v3655_v12, %v4897_v11 }
 0x247   : > { %v3657_v15 = vpop.eup %3656  ;;  %3676 = vpow2.f32 %v3030_v23  ;;  %2249 = vmatprep.mubr.bf16.mxu0 %v4919_v60  ;;  %v4718_v62 = vmul.f32 %v1766_v0, %v1290_v17  ;;  %v1292_v46 = vpop.f32.mrb[78].mxu1 }
 0x248   : > { %v3659_v8 = vpop.eup %3658  ;;  %3678 = vpow2.f32 %v3031_v29  ;;  %v4720_v37 = vmul.f32 %v1767_v21, %v1292_v46  ;;  %v1294_v39 = vpop.f32.mrb[79].mxu1  ;;  %v1770_v10 = vmul.f32 %v3657_v15, %v4898_v35 }
 0x249   : > { %v3661_v6 = vpop.eup %3660  ;;  %3680 = vpow2.f32 %v3032_v56  ;;  %v4722_v20 = vmul.f32 %v1768_v38, %v1294_v39  ;;  %v1771_v48 = vmul.f32 %v3659_v8, %v4899_v55  ;;  %v4923_v38 = vld [vmem:[#allocation26_spill] sm:$0xff] }
 0x24a   : > { %v3663_v50 = vpop.eup %3662  ;;  %3682 = vpow2.f32 %v3033_v14  ;;  %v1935_v1 = vpack.c.bf16 %v4720_v37, %v4715_v36  ;;  %v1585_v9 = vadd.f32 1.0, %v3661_v6  ;;  %v1851_v36 = vld [vmem:[#allocation2 + $0x10] sm:$0xff] }
 0x24b   : > { %v3665_v51 = vpop.eup %3664  ;;  %3684 = vrcp.f32 %v1584_v19  ;;  %v1936_v28 = vpack.c.bf16 %v4722_v20, %v4718_v62  ;;  %v1586_v59 = vadd.f32 1.0, %v3663_v50  ;;  %v4922_v19 = vld [vmem:[#allocation25_spill] sm:$0xff] }
 0x24c   : > { %v3667_v24 = vpop.eup %3666  ;;  %v1587_v22 = vadd.f32 1.0, %v3665_v51  ;;  %3686 = vrcp.f32 %v1585_v9 }
 0x24d   : > { %v3669_v44 = vpop.eup %3668  ;;  %v1298_v33 = vpop.f32.mrb[80].mxu1  ;;  %v1588_v54 = vadd.f32 1.0, %v3667_v24  ;;  %3688 = vrcp.f32 %v1586_v59 }
 0x24e   : > { %v3671_v5 = vpop.eup %3670  ;;  %2250 = vmatmul.mubr.bf16.gmra.mrb[64].mxu0 %v4920_v41  ;;  %v4737_v27 = vmul.f32 %v1769_v30, %v1298_v33  ;;  %v1300_v11 = vpop.f32.mrb[81].mxu1  ;;  %v1772_v35 = vmul.f32 %v3669_v44, %v4921_v32  ;;  %3690 = vrcp.f32 %v1587_v22  ;;  %v4926_v41 = vld [vmem:[#allocation30_spill] sm:$0xff] }
 0x24f   : > { %v3673_v2 = vpop.eup %3672  ;;  %2259 = vmatprep.mubr.bf16.mxu0 %v1932_v13  ;;  %v4740_v29 = vmul.f32 %v1770_v10, %v1300_v11  ;;  %v1302_v45 = vpop.f32.mrb[82].mxu1  ;;  %3692 = vrcp.f32 %v1588_v54  ;;  %v1773_v15 = vmul.f32 %v3671_v5, %v4907_v4  ;;  %v4925_v10 = vld [vmem:[#allocation29_spill] sm:$0xff]  ;;  %v4927_v54 = vld [vmem:[#allocation31_spill] sm:$0xff] }
 0x250   : > { %v3675_v23 = vpop.eup %3674  ;;  %v4742_v57 = vmul.f32 %v1771_v48, %v1302_v45  ;;  %v1304_v55 = vpop.f32.mrb[83].mxu1  ;;  %v1774_v60 = vmul.f32 %v3673_v2, %v4922_v19 }
 0x251   : > { %v3677_v58 = vpop.eup %3676  ;;  %v1836_v12 = vmul.f32 %v1772_v35, %v1304_v55  ;;  %v1775_v46 = vmul.f32 %v3675_v23, %v4923_v38 }
 0x252   : > { %v3679_v56 = vpop.eup %3678  ;;  %v1937_v61 = vpack.c.bf16 %v4742_v57, %v4737_v27  ;;  %v1589_v0 = vadd.f32 1.0, %v3677_v58  ;;  %v1853_v57 = vld [vmem:[#allocation2 + $0x20] sm:$0xff] }
 0x253   : > { %v3681_v40 = vpop.eup %3680  ;;  %v1938_v14 = vpack.c.bf16 %v1836_v12, %v4740_v29  ;;  %v1590_v21 = vadd.f32 1.0, %v3679_v56 }
 0x254   : > { %v3683_v13 = vpop.eup %3682  ;;  %v1591_v17 = vadd.f32 1.0, %v3681_v40  ;;  %3694 = vrcp.f32 %v1589_v0 }
 0x255   : > { %v3685_v3 = vpop.eup %3684  ;;  %v1308_v8 = vpop.f32.mrb[84].mxu1  ;;  %v1592_v6 = vadd.f32 1.0, %v3683_v13  ;;  %3696 = vrcp.f32 %v1590_v21 }
 0x256   : > { %2260 = vmatmul.mubr.bf16.gmra.mrb[68].mxu0 %v1931_v63  ;;  %v1837_v39 = vmul.f32 %v1773_v15, %v1308_v8  ;;  %v1310_v50 = vpop.f32.mrb[85].mxu1  ;;  %v1776_v4 = vmul.f32 %v3685_v3, %v4910_v42  ;;  %v3687_v47 = vpop.eup %3686  ;;  %3698 = vrcp.f32 %v1591_v17 }
 0x257   : > { %2269 = vmatprep.mubr.bf16.mxu0 %v1934_v52  ;;  %v1838_v51 = vmul.f32 %v1774_v60, %v1310_v50  ;;  %v1312_v24 = vpop.f32.mrb[86].mxu1  ;;  %v3689_v63 = vpop.eup %3688  ;;  %3700 = vrcp.f32 %v1592_v6  ;;  %v1777_v52 = vmul.f32 %v3687_v47, %v4924_v26  ;;  %v1855_v50 = vld [vmem:[#allocation2 + $0x30] sm:$0xff] }
 0x258   : > { %v1839_v9 = vmul.f32 %v1775_v46, %v1312_v24  ;;  %v1314_v44 = vpop.f32.mrb[87].mxu1  ;;  %v3691_v59 = vpop.eup %3690  ;;  %v1778_v22 = vmul.f32 %v3689_v63, %v4925_v10  ;;  %v1856_v24 = vld [vmem:[#allocation2 + $0x38] sm:$0xff] }
 0x259   : > { %v1840_v34 = vmul.f32 %v1776_v4, %v1314_v44  ;;  %v3693_v31 = vpop.eup %3692  ;;  %v1779_v33 = vmul.f32 %v3691_v59, %v4926_v41  ;;  %v1858_v59 = vld [vmem:[#allocation2 + $0x48] sm:$0xff]  ;;  %v1860_v10 = vld [vmem:[#allocation2 + $0x58] sm:$0xff] }
 0x25a   : > { %v1939_v30 = vpack.c.bf16 %v1839_v9, %v1837_v39  ;;  %v1780_v11 = vmul.f32 %v3693_v31, %v4927_v54  ;;  %v1859_v31 = vld [vmem:[#allocation2 + $0x50] sm:$0xff]  ;;  %v1862_v54 = vld [vmem:[#allocation2 + $0x68] sm:$0xff] }
 0x25b   : > { %v1940_v5 = vpack.c.bf16 %v1840_v34, %v1838_v51 }
 0x25d   : > { %v1318_v42 = vpop.f32.mrb[88].mxu1 }
 0x25e   : > { %2270 = vmatmul.mubr.bf16.gmra.mrb[72].mxu0 %v1933_v25  ;;  %v1841_v2 = vmul.f32 %v1777_v52, %v1318_v42  ;;  %v1320_v48 = vpop.f32.mrb[89].mxu1  ;;  %v3695_v45 = vpop.eup %3694 }
 0x25f   : > { %2279 = vmatprep.mubr.bf16.mxu0 %v1936_v28  ;;  %v1842_v23 = vmul.f32 %v1778_v22, %v1320_v48  ;;  %v1322_v32 = vpop.f32.mrb[90].mxu1  ;;  %v3697_v55 = vpop.eup %3696  ;;  %v1781_v12 = vmul.f32 %v3695_v45, %v4915_v53  ;;  %v1861_v48 = vld [vmem:[#allocation2 + $0x60] sm:$0xff] }
 0x260   : > { %v1843_v35 = vmul.f32 %v1779_v33, %v1322_v32  ;;  %v1324_v29 = vpop.f32.mrb[91].mxu1  ;;  %v3699_v49 = vpop.eup %3698  ;;  %v1782_v62 = vmul.f32 %v3697_v55, %v4916_v43  ;;  %v1849_v43 = vld [vmem:[#allocation2] sm:$0xff] }
 0x261   : > { %v1844_v58 = vmul.f32 %v1780_v11, %v1324_v29  ;;  %v3701_v56 = vpop.eup %3700  ;;  %v1783_v28 = vmul.f32 %v3699_v49, %v4917_v18  ;;  %v1850_v18 = vld [vmem:[#allocation2 + $0x8] sm:$0xff]  ;;  %v1864_v29 = vld [vmem:[#allocation2 + $0x78] sm:$0xff] }
 0x262   : > { %v1941_v7 = vpack.c.bf16 %v1843_v35, %v1841_v2  ;;  %v1784_v0 = vmul.f32 %v3701_v56, %v4918_v16  ;;  %v1866_v56 = vld [vmem:[#allocation2 + $0x88] sm:$0xff] }
 0x263   : > { %v1942_v25 = vpack.c.bf16 %v1844_v58, %v1842_v23  ;;  %v1863_v23 = vld [vmem:[#allocation2 + $0x70] sm:$0xff] }
 0x265   : > { %v1328_v20 = vpop.f32.mrb[92].mxu1 }
 0x266   : > { %2280 = vmatmul.mubr.bf16.gmra.mrb[76].mxu0 %v1935_v1  ;;  %v1845_v40 = vmul.f32 %v1781_v12, %v1328_v20  ;;  %v1330_v13 = vpop.f32.mrb[93].mxu1 }
 0x267   : > { %2289 = vmatprep.mubr.bf16.mxu0 %v1938_v14  ;;  %v1846_v3 = vmul.f32 %v1782_v62, %v1330_v13  ;;  %v1332_v15 = vpop.f32.mrb[94].mxu1  ;;  %v1852_v14 = vld [vmem:[#allocation2 + $0x18] sm:$0xff]  ;;  %v1867_v62 = vld [vmem:[#allocation2 + $0x90] sm:$0xff] }
 0x268   : > { %v1847_v21 = vmul.f32 %v1783_v28, %v1332_v15  ;;  %v1334_v19 = vpop.f32.mrb[95].mxu1 }
 0x269   : > { %v1848_v60 = vmul.f32 %v1784_v0, %v1334_v19  ;;  %v1869_v19 = vld [vmem:[#allocation2 + $0xa0] sm:$0xff] }
 0x26a   : > { %v1943_v53 = vpack.c.bf16 %v1847_v21, %v1845_v40  ;;  %v1868_v40 = vld [vmem:[#allocation2 + $0x98] sm:$0xff] }
 0x26b   : > { %v1944_v17 = vpack.c.bf16 %v1848_v60, %v1846_v3  ;;  %v1870_v60 = vld [vmem:[#allocation2 + $0xa8] sm:$0xff] }
 0x26e   : > { %2290 = vmatmul.mubr.bf16.gmra.mrb[80].mxu0 %v1937_v61  ;;  %v1854_v61 = vld [vmem:[#allocation2 + $0x28] sm:$0xff] }
 0x26f   : > { %2299 = vmatprep.mubr.bf16.mxu0 %v1940_v5 }
 0x276   : > { %2300 = vmatmul.mubr.bf16.gmra.mrb[84].mxu0 %v1939_v30  ;;  %v1857_v30 = vld [vmem:[#allocation2 + $0x40] sm:$0xff] }
 0x277   : > { %2309 = vmatprep.mubr.bf16.mxu0 %v1942_v25  ;;  %v1865_v25 = vld [vmem:[#allocation2 + $0x80] sm:$0xff] }
 0x27e   : > { %2310 = vmatmul.mubr.bf16.gmra.mrb[88].mxu0 %v1941_v7 }
 0x27f   : > { %2319 = vmatprep.mubr.bf16.mxu0 %v1944_v17  ;;  %v1871_v17 = vld [vmem:[#allocation2 + $0xb0] sm:$0xff] }
 0x286   : > { %2320 = vmatmul.mubr.bf16.gmra.mrb[92].mxu0 %v1943_v53 }
 0x2c9   : > { %v2171_v16 = vpop.f32.mrb[32].mxu0 }
 0x2ca   : > { %v2330_v37 = vadd.f32 %v2171_v16, %v1849_v43  ;;  %v2173_v1 = vpop.f32.mrb[33].mxu0  ;;  %v1872_v16 = vld [vmem:[#allocation2 + $0xb8] sm:$0xff] }
 0x2cb   : > { %v2331_v8 = vadd.f32 %v2173_v1, %v1850_v18  ;;  %v2175_v38 = vpop.f32.mrb[34].mxu0 }
 0x2cc   : > { %2394 = vst [vmem:[#allocation2] sm:$0xff] %v2330_v37  ;;  %v2332_v46 = vadd.f32 %v2175_v38, %v1851_v36  ;;  %v2177_v6 = vpop.f32.mrb[35].mxu0  ;;  %v1873_v38 = vld [vmem:[#allocation2 + $0xc0] sm:$0xff] }
 0x2cd   : > { %2395 = vst [vmem:[#allocation2 + $0x8] sm:$0xff] %v2331_v8  ;;  %v2333_v27 = vadd.f32 %v2177_v6, %v1852_v14 }
 0x2ce   : > { %2396 = vst [vmem:[#allocation2 + $0x10] sm:$0xff] %v2332_v46  ;;  %v1874_v46 = vld [vmem:[#allocation2 + $0xc8] sm:$0xff] }
 0x2cf   : > { %2397 = vst [vmem:[#allocation2 + $0x18] sm:$0xff] %v2333_v27  ;;  %v1875_v27 = vld [vmem:[#allocation2 + $0xd0] sm:$0xff] }
 0x2d1   : > { %v2181_v39 = vpop.f32.mrb[36].mxu0 }
 0x2d2   : > { %v2334_v4 = vadd.f32 %v2181_v39, %v1853_v57  ;;  %v2183_v51 = vpop.f32.mrb[37].mxu0  ;;  %v1876_v39 = vld [vmem:[#allocation2 + $0xd8] sm:$0xff] }
 0x2d3   : > { %v2335_v9 = vadd.f32 %v2183_v51, %v1854_v61  ;;  %v2185_v44 = vpop.f32.mrb[38].mxu0 }
 0x2d4   : > { %2398 = vst [vmem:[#allocation2 + $0x20] sm:$0xff] %v2334_v4  ;;  %v2336_v47 = vadd.f32 %v2185_v44, %v1855_v50  ;;  %v2187_v34 = vpop.f32.mrb[39].mxu0  ;;  %v1877_v44 = vld [vmem:[#allocation2 + $0xe0] sm:$0xff] }
 0x2d5   : > { %2399 = vst [vmem:[#allocation2 + $0x28] sm:$0xff] %v2335_v9  ;;  %v2337_v63 = vadd.f32 %v2187_v34, %v1856_v24 }
 0x2d6   : > { %2400 = vst [vmem:[#allocation2 + $0x30] sm:$0xff] %v2336_v47  ;;  %v1878_v47 = vld [vmem:[#allocation2 + $0xe8] sm:$0xff] }
 0x2d7   : > { %2401 = vst [vmem:[#allocation2 + $0x38] sm:$0xff] %v2337_v63  ;;  %v1879_v63 = vld [vmem:[#allocation2 + $0xf0] sm:$0xff] }
 0x2d9   : > { %v2191_v5 = vpop.f32.mrb[40].mxu0 }
 0x2da   : > { %v2338_v26 = vadd.f32 %v2191_v5, %v1857_v30  ;;  %v2193_v52 = vpop.f32.mrb[41].mxu0  ;;  %v1880_v5 = vld [vmem:[#allocation2 + $0xf8] sm:$0xff] }
 0x2db   : > { %v2339_v22 = vadd.f32 %v2193_v52, %v1858_v59  ;;  %v2195_v42 = vpop.f32.mrb[42].mxu0 }
 0x2dc   : > { %2402 = vst [vmem:[#allocation2 + $0x40] sm:$0xff] %v2338_v26  ;;  %v2340_v41 = vadd.f32 %v2195_v42, %v1859_v31  ;;  %v2197_v33 = vpop.f32.mrb[43].mxu0  ;;  %v1881_v42 = vld [vmem:[#allocation2 + $0x100] sm:$0xff] }
 0x2dd   : > { %2403 = vst [vmem:[#allocation2 + $0x48] sm:$0xff] %v2339_v22  ;;  %v2341_v2 = vadd.f32 %v2197_v33, %v1860_v10 }
 0x2de   : > { %2404 = vst [vmem:[#allocation2 + $0x50] sm:$0xff] %v2340_v41  ;;  %v1882_v41 = vld [vmem:[#allocation2 + $0x108] sm:$0xff] }
 0x2df   : > { %2405 = vst [vmem:[#allocation2 + $0x58] sm:$0xff] %v2341_v2  ;;  %v1883_v2 = vld [vmem:[#allocation2 + $0x110] sm:$0xff] }
 0x2e1   : > { %v2201_v11 = vpop.f32.mrb[44].mxu0 }
 0x2e2   : > { %v2342_v32 = vadd.f32 %v2201_v11, %v1861_v48  ;;  %v2203_v35 = vpop.f32.mrb[45].mxu0  ;;  %v1884_v11 = vld [vmem:[#allocation2 + $0x118] sm:$0xff] }
 0x2e3   : > { %v2343_v45 = vadd.f32 %v2203_v35, %v1862_v54  ;;  %v2205_v58 = vpop.f32.mrb[46].mxu0 }
 0x2e4   : > { %2406 = vst [vmem:[#allocation2 + $0x60] sm:$0xff] %v2342_v32  ;;  %v2344_v55 = vadd.f32 %v2205_v58, %v1863_v23  ;;  %v2207_v7 = vpop.f32.mrb[47].mxu0  ;;  %v1885_v58 = vld [vmem:[#allocation2 + $0x120] sm:$0xff] }
 0x2e5   : > { %2407 = vst [vmem:[#allocation2 + $0x68] sm:$0xff] %v2343_v45  ;;  %v2345_v49 = vadd.f32 %v2207_v7, %v1864_v29 }
 0x2e6   : > { %2408 = vst [vmem:[#allocation2 + $0x70] sm:$0xff] %v2344_v55  ;;  %v1886_v55 = vld [vmem:[#allocation2 + $0x128] sm:$0xff] }
 0x2e7   : > { %2409 = vst [vmem:[#allocation2 + $0x78] sm:$0xff] %v2345_v49  ;;  %v1887_v49 = vld [vmem:[#allocation2 + $0x130] sm:$0xff] }
 0x2f4   : > { %v2211_v12 = vpop.f32.mrb[48].mxu0 }
 0x2f5   : > { %v2346_v20 = vadd.f32 %v2211_v12, %v1865_v25  ;;  %v2213_v28 = vpop.f32.mrb[49].mxu0  ;;  %v1888_v12 = vld [vmem:[#allocation2 + $0x138] sm:$0xff] }
 0x2f6   : > { %v2347_v13 = vadd.f32 %v2213_v28, %v1866_v56  ;;  %v2215_v0 = vpop.f32.mrb[50].mxu0 }
 0x2f7   : > { %2410 = vst [vmem:[#allocation2 + $0x80] sm:$0xff] %v2346_v20  ;;  %v2348_v3 = vadd.f32 %v2215_v0, %v1867_v62  ;;  %v2217_v15 = vpop.f32.mrb[51].mxu0  ;;  %v1889_v0 = vld [vmem:[#allocation2 + $0x140] sm:$0xff] }
 0x2f8   : > { %2411 = vst [vmem:[#allocation2 + $0x88] sm:$0xff] %v2347_v13  ;;  %v2349_v21 = vadd.f32 %v2217_v15, %v1868_v40 }
 0x2f9   : > { %2412 = vst [vmem:[#allocation2 + $0x90] sm:$0xff] %v2348_v3  ;;  %v1890_v3 = vld [vmem:[#allocation2 + $0x148] sm:$0xff] }
 0x2fa   : > { %2413 = vst [vmem:[#allocation2 + $0x98] sm:$0xff] %v2349_v21  ;;  %v1891_v21 = vld [vmem:[#allocation2 + $0x150] sm:$0xff] }
 0x2fc   : > { %v2221_v53 = vpop.f32.mrb[52].mxu0 }
 0x2fd   : > { %v2350_v43 = vadd.f32 %v2221_v53, %v1869_v19  ;;  %v2223_v18 = vpop.f32.mrb[53].mxu0  ;;  %v1892_v53 = vld [vmem:[#allocation2 + $0x158] sm:$0xff] }
 0x2fe   : > { %v2351_v36 = vadd.f32 %v2223_v18, %v1870_v60  ;;  %v2225_v37 = vpop.f32.mrb[54].mxu0 }
 0x2ff   : > { %2414 = vst [vmem:[#allocation2 + $0xa0] sm:$0xff] %v2350_v43  ;;  %v2352_v1 = vadd.f32 %v2225_v37, %v1871_v17  ;;  %v2227_v14 = vpop.f32.mrb[55].mxu0  ;;  %v1893_v37 = vld [vmem:[#allocation2 + $0x160] sm:$0xff] }
 0x300   : > { %2415 = vst [vmem:[#allocation2 + $0xa8] sm:$0xff] %v2351_v36  ;;  %v2353_v8 = vadd.f32 %v2227_v14, %v1872_v16 }
 0x301   : > { %2416 = vst [vmem:[#allocation2 + $0xb0] sm:$0xff] %v2352_v1  ;;  %v1894_v1 = vld [vmem:[#allocation2 + $0x168] sm:$0xff] }
 0x302   : > { %2417 = vst [vmem:[#allocation2 + $0xb8] sm:$0xff] %v2353_v8  ;;  %v1895_v8 = vld [vmem:[#allocation2 + $0x170] sm:$0xff] }
 0x311   : > { %v2231_v6 = vpop.f32.mrb[56].mxu0 }
 0x312   : > { %v2354_v57 = vadd.f32 %v2231_v6, %v1873_v38  ;;  %v2233_v61 = vpop.f32.mrb[57].mxu0  ;;  %v1896_v6 = vld [vmem:[#allocation2 + $0x178] sm:$0xff] }
 0x313   : > { %v2355_v50 = vadd.f32 %v2233_v61, %v1874_v46  ;;  %v2235_v4 = vpop.f32.mrb[58].mxu0 }
 0x314   : > { %2418 = vst [vmem:[#allocation2 + $0xc0] sm:$0xff] %v2354_v57  ;;  %v2356_v51 = vadd.f32 %v2235_v4, %v1875_v27  ;;  %v2237_v24 = vpop.f32.mrb[59].mxu0  ;;  %v1897_v4 = vld [vmem:[#allocation2 + $0x180] sm:$0xff] }
 0x315   : > { %2419 = vst [vmem:[#allocation2 + $0xc8] sm:$0xff] %v2355_v50  ;;  %v2357_v9 = vadd.f32 %v2237_v24, %v1876_v39 }
 0x316   : > { %2420 = vst [vmem:[#allocation2 + $0xd0] sm:$0xff] %v2356_v51  ;;  %v1898_v51 = vld [vmem:[#allocation2 + $0x188] sm:$0xff] }
 0x317   : > { %2421 = vst [vmem:[#allocation2 + $0xd8] sm:$0xff] %v2357_v9  ;;  %v1899_v9 = vld [vmem:[#allocation2 + $0x190] sm:$0xff] }
 0x319   : > { %v2241_v34 = vpop.f32.mrb[60].mxu0 }
 0x31a   : > { %v2358_v30 = vadd.f32 %v2241_v34, %v1877_v44  ;;  %v2243_v59 = vpop.f32.mrb[61].mxu0  ;;  %v1900_v34 = vld [vmem:[#allocation2 + $0x198] sm:$0xff] }
 0x31b   : > { %v2359_v31 = vadd.f32 %v2243_v59, %v1878_v47  ;;  %v2245_v26 = vpop.f32.mrb[62].mxu0 }
 0x31c   : > { %2422 = vst [vmem:[#allocation2 + $0xe0] sm:$0xff] %v2358_v30  ;;  %v2360_v52 = vadd.f32 %v2245_v26, %v1879_v63  ;;  %v2247_v10 = vpop.f32.mrb[63].mxu0  ;;  %v1901_v26 = vld [vmem:[#allocation2 + $0x1a0] sm:$0xff] }
 0x31d   : > { %2423 = vst [vmem:[#allocation2 + $0xe8] sm:$0xff] %v2359_v31  ;;  %v2361_v22 = vadd.f32 %v2247_v10, %v1880_v5 }
 0x31e   : > { %2424 = vst [vmem:[#allocation2 + $0xf0] sm:$0xff] %v2360_v52  ;;  %v1902_v52 = vld [vmem:[#allocation2 + $0x1a8] sm:$0xff] }
 0x31f   : > { %2425 = vst [vmem:[#allocation2 + $0xf8] sm:$0xff] %v2361_v22  ;;  %v1903_v22 = vld [vmem:[#allocation2 + $0x1b0] sm:$0xff] }
 0x321   : > { %v2251_v33 = vpop.f32.mrb[64].mxu0 }
 0x322   : > { %v2362_v48 = vadd.f32 %v2251_v33, %v1881_v42  ;;  %v2253_v54 = vpop.f32.mrb[65].mxu0  ;;  %v1904_v33 = vld [vmem:[#allocation2 + $0x1b8] sm:$0xff] }
 0x323   : > { %v2363_v23 = vadd.f32 %v2253_v54, %v1882_v41  ;;  %v2255_v32 = vpop.f32.mrb[66].mxu0 }
 0x324   : > { %2426 = vst [vmem:[#allocation2 + $0x100] sm:$0xff] %v2362_v48  ;;  %v2364_v35 = vadd.f32 %v2255_v32, %v1883_v2  ;;  %v2257_v29 = vpop.f32.mrb[67].mxu0  ;;  %v1905_v32 = vld [vmem:[#allocation2 + $0x1c0] sm:$0xff] }
 0x325   : > { %2427 = vst [vmem:[#allocation2 + $0x108] sm:$0xff] %v2363_v23  ;;  %v2365_v45 = vadd.f32 %v2257_v29, %v1884_v11 }
 0x326   : > { %2428 = vst [vmem:[#allocation2 + $0x110] sm:$0xff] %v2364_v35  ;;  %v1906_v35 = vld [vmem:[#allocation2 + $0x1c8] sm:$0xff] }
 0x327   : > { %2429 = vst [vmem:[#allocation2 + $0x118] sm:$0xff] %v2365_v45  ;;  %v1907_v45 = vld [vmem:[#allocation2 + $0x1d0] sm:$0xff] }
 0x329   : > { %v2261_v7 = vpop.f32.mrb[68].mxu0 }
 0x32a   : > { %v2366_v25 = vadd.f32 %v2261_v7, %v1885_v58  ;;  %v2263_v56 = vpop.f32.mrb[69].mxu0  ;;  %v1908_v7 = vld [vmem:[#allocation2 + $0x1d8] sm:$0xff] }
 0x32b   : > { %v2367_v62 = vadd.f32 %v2263_v56, %v1886_v55  ;;  %v2265_v20 = vpop.f32.mrb[70].mxu0 }
 0x32c   : > { %2430 = vst [vmem:[#allocation2 + $0x120] sm:$0xff] %v2366_v25  ;;  %v2368_v28 = vadd.f32 %v2265_v20, %v1887_v49  ;;  %v2267_v40 = vpop.f32.mrb[71].mxu0  ;;  %v1909_v20 = vld [vmem:[#allocation2 + $0x1e0] sm:$0xff] }
 0x32d   : > { %2431 = vst [vmem:[#allocation2 + $0x128] sm:$0xff] %v2367_v62  ;;  %v2369_v13 = vadd.f32 %v2267_v40, %v1888_v12 }
 0x32e   : > { %2432 = vst [vmem:[#allocation2 + $0x130] sm:$0xff] %v2368_v28  ;;  %v1910_v28 = vld [vmem:[#allocation2 + $0x1e8] sm:$0xff] }
 0x32f   : > { %2433 = vst [vmem:[#allocation2 + $0x138] sm:$0xff] %v2369_v13  ;;  %v1911_v13 = vld [vmem:[#allocation2 + $0x1f0] sm:$0xff] }
 0x331   : > { %v2271_v15 = vpop.f32.mrb[72].mxu0 }
 0x332   : > { %v2370_v19 = vadd.f32 %v2271_v15, %v1889_v0  ;;  %v2273_v60 = vpop.f32.mrb[73].mxu0  ;;  %v1912_v15 = vld [vmem:[#allocation2 + $0x1f8] sm:$0xff] }
 0x333   : > { %v2371_v17 = vadd.f32 %v2273_v60, %v1890_v3  ;;  %v2275_v43 = vpop.f32.mrb[74].mxu0 }
 0x334   : > { %2434 = vst [vmem:[#allocation2 + $0x140] sm:$0xff] %v2370_v19  ;;  %v2372_v18 = vadd.f32 %v2275_v43, %v1891_v21  ;;  %v2277_v16 = vpop.f32.mrb[75].mxu0  ;;  %v2462_v43 = vld [vmem:[#allocation2] sm:$0xff] (!%p3066_p11) }
 0x335   : > { %2435 = vst [vmem:[#allocation2 + $0x148] sm:$0xff] %v2371_v17  ;;  %v2373_v36 = vadd.f32 %v2277_v16, %v1892_v53  ;;  %v2464_v16 = vld [vmem:[#allocation2 + $0x10] sm:$0xff] (!%p3066_p11) }
 0x336   : > { %2436 = vst [vmem:[#allocation2 + $0x150] sm:$0xff] %v2372_v18  ;;  %v2463_v18 = vld [vmem:[#allocation2 + $0x8] sm:$0xff] (!%p3066_p11) }
 0x337   : > { %2437 = vst [vmem:[#allocation2 + $0x158] sm:$0xff] %v2373_v36  ;;  %v3106_v36 = vpack.c.bf16 (!%p3066_p11), %v2463_v18, %v2462_v43 }
 0x339   : > { %v2281_v14 = vpop.f32.mrb[76].mxu0  ;;  %2718 = vst [vmem:[#allocation9] sm:$0xff] (!%p3066_p11), %v3106_v36 }
 0x33a   : > { %v2374_v38 = vadd.f32 %v2281_v14, %v1893_v37  ;;  %v2283_v46 = vpop.f32.mrb[77].mxu0  ;;  %v2465_v37 = vld [vmem:[#allocation2 + $0x18] sm:$0xff] (!%p3066_p11)  ;;  %v2467_v14 = vld [vmem:[#allocation2 + $0x28] sm:$0xff] (!%p3066_p11) }
 0x33b   : > { %v2375_v27 = vadd.f32 %v2283_v46, %v1894_v1  ;;  %v2285_v57 = vpop.f32.mrb[78].mxu0  ;;  %v2466_v1 = vld [vmem:[#allocation2 + $0x20] sm:$0xff] (!%p3066_p11)  ;;  %v2468_v46 = vld [vmem:[#allocation2 + $0x30] sm:$0xff] (!%p3066_p11) }
 0x33c   : > { %2438 = vst [vmem:[#allocation2 + $0x160] sm:$0xff] %v2374_v38  ;;  %v2376_v61 = vadd.f32 %v2285_v57, %v1895_v8  ;;  %v2287_v39 = vpop.f32.mrb[79].mxu0  ;;  %v3107_v8 = vpack.c.bf16 (!%p3066_p11), %v2465_v37, %v2464_v16  ;;  %v3108_v38 = vpack.c.bf16 (!%p3066_p11), %v2467_v14, %v2466_v1 }
 0x33d   : > { %2439 = vst [vmem:[#allocation2 + $0x168] sm:$0xff] %v2375_v27  ;;  %v2377_v50 = vadd.f32 %v2287_v39, %v1896_v6  ;;  %v2469_v6 = vld [vmem:[#allocation2 + $0x38] sm:$0xff] (!%p3066_p11)  ;;  %v2470_v27 = vld [vmem:[#allocation2 + $0x40] sm:$0xff] (!%p3066_p11)  ;;  %v2472_v39 = vld [vmem:[#allocation2 + $0x50] sm:$0xff] (!%p3066_p11) }
 0x33e   : > { %2440 = vst [vmem:[#allocation2 + $0x170] sm:$0xff] %v2376_v61  ;;  %v3109_v57 = vpack.c.bf16 (!%p3066_p11), %v2469_v6, %v2468_v46  ;;  %v2471_v61 = vld [vmem:[#allocation2 + $0x48] sm:$0xff] (!%p3066_p11)  ;;  %2719 = vst [vmem:[#allocation9 + $0x8] sm:$0xff] (!%p3066_p11), %v3107_v8  ;;  %v2505_v43 = vld [vmem:[#allocation2 + $0x158] sm:$0xff] (!%p3066_p11) }
 0x33f   : > { %2441 = vst [vmem:[#allocation2 + $0x178] sm:$0xff] %v2377_v50  ;;  %v2473_v50 = vld [vmem:[#allocation2 + $0x58] sm:$0xff] (!%p3066_p11)  ;;  %2720 = vst [vmem:[#allocation9 + $0x10] sm:$0xff] (!%p3066_p11), %v3108_v38 }
 0x340   : > { %2721 = vst [vmem:[#allocation9 + $0x18] sm:$0xff] (!%p3066_p11), %v3109_v57 }
 0x341   : > { %v2291_v24 = vpop.f32.mrb[80].mxu0 }
 0x342   : > { %v2378_v44 = vadd.f32 %v2291_v24, %v1897_v4  ;;  %v2293_v47 = vpop.f32.mrb[81].mxu0  ;;  %v3110_v4 = vpack.c.bf16 (!%p3066_p11), %v2471_v61, %v2470_v27  ;;  %v2474_v24 = vld [vmem:[#allocation2 + $0x60] sm:$0xff] (!%p3066_p11) }
 0x343   : > { %v2379_v63 = vadd.f32 %v2293_v47, %v1898_v51  ;;  %v2295_v30 = vpop.f32.mrb[82].mxu0  ;;  %v3111_v51 = vpack.c.bf16 (!%p3066_p11), %v2473_v50, %v2472_v39  ;;  %v2506_v18 = vld [vmem:[#allocation2 + $0x160] sm:$0xff] (!%p3066_p11) }
 0x344   : > { %2442 = vst [vmem:[#allocation2 + $0x180] sm:$0xff] %v2378_v44  ;;  %v2380_v59 = vadd.f32 %v2295_v30, %v1899_v9  ;;  %v2297_v5 = vpop.f32.mrb[83].mxu0  ;;  %v2475_v9 = vld [vmem:[#allocation2 + $0x68] sm:$0xff] (!%p3066_p11)  ;;  %v2476_v44 = vld [vmem:[#allocation2 + $0x70] sm:$0xff] (!%p3066_p11)  ;;  %2722 = vst [vmem:[#allocation9 + $0x20] sm:$0xff] (!%p3066_p11), %v3110_v4 }
 0x345   : > { %2443 = vst [vmem:[#allocation2 + $0x188] sm:$0xff] %v2379_v63  ;;  %v2381_v31 = vadd.f32 %v2297_v5, %v1900_v34  ;;  %v3112_v47 = vpack.c.bf16 (!%p3066_p11), %v2475_v9, %v2474_v24  ;;  %v2477_v34 = vld [vmem:[#allocation2 + $0x78] sm:$0xff] (!%p3066_p11)  ;;  %v2478_v63 = vld [vmem:[#allocation2 + $0x80] sm:$0xff] (!%p3066_p11)  ;;  %v2479_v30 = vld [vmem:[#allocation2 + $0x88] sm:$0xff] (!%p3066_p11) }
 0x346   : > { %2444 = vst [vmem:[#allocation2 + $0x190] sm:$0xff] %v2380_v59  ;;  %2723 = vst [vmem:[#allocation9 + $0x28] sm:$0xff] (!%p3066_p11), %v3111_v51  ;;  %v3113_v59 = vpack.c.bf16 (!%p3066_p11), %v2477_v34, %v2476_v44  ;;  %v3114_v5 = vpack.c.bf16 (!%p3066_p11), %v2479_v30, %v2478_v63  ;;  %v2507_v36 = vld [vmem:[#allocation2 + $0x168] sm:$0xff] (!%p3066_p11)  ;;  %v2508_v37 = vld [vmem:[#allocation2 + $0x170] sm:$0xff] (!%p3066_p11) }
 0x347   : > { %2445 = vst [vmem:[#allocation2 + $0x198] sm:$0xff] %v2381_v31  ;;  %v2480_v31 = vld [vmem:[#allocation2 + $0x90] sm:$0xff] (!%p3066_p11)  ;;  %2724 = vst [vmem:[#allocation9 + $0x30] sm:$0xff] (!%p3066_p11), %v3112_v47  ;;  %v2509_v1 = vld [vmem:[#allocation2 + $0x178] sm:$0xff] (!%p3066_p11)  ;;  %v3128_v14 = vpack.c.bf16 (!%p3066_p11), %v2507_v36, %v2506_v18 }
 0x348   : > { %2725 = vst [vmem:[#allocation9 + $0x38] sm:$0xff] (!%p3066_p11), %v3113_v59  ;;  %2726 = vst [vmem:[#allocation9 + $0x40] sm:$0xff] (!%p3066_p11), %v3114_v5  ;;  %v3129_v8 = vpack.c.bf16 (!%p3066_p11), %v2509_v1, %v2508_v37 }
 0x349   : > { %v2301_v10 = vpop.f32.mrb[84].mxu0  ;;  %2740 = vst [vmem:[#allocation9 + $0xb0] sm:$0xff] (!%p3066_p11), %v3128_v14 }
 0x34a   : > { %v2382_v42 = vadd.f32 %v2301_v10, %v1901_v26  ;;  %v2303_v41 = vpop.f32.mrb[85].mxu0  ;;  %v2481_v26 = vld [vmem:[#allocation2 + $0x98] sm:$0xff] (!%p3066_p11)  ;;  %2741 = vst [vmem:[#allocation9 + $0xb8] sm:$0xff] (!%p3066_p11), %v3129_v8 }
 0x34b   : > { %v2383_v2 = vadd.f32 %v2303_v41, %v1902_v52  ;;  %v2305_v48 = vpop.f32.mrb[86].mxu0  ;;  %v2482_v52 = vld [vmem:[#allocation2 + $0xa0] sm:$0xff] (!%p3066_p11)  ;;  %v3115_v10 = vpack.c.bf16 (!%p3066_p11), %v2481_v26, %v2480_v31  ;;  %v2485_v41 = vld [vmem:[#allocation2 + $0xb8] sm:$0xff] (!%p3066_p11) }
 0x34c   : > { %2446 = vst [vmem:[#allocation2 + $0x1a0] sm:$0xff] %v2382_v42  ;;  %v2384_v54 = vadd.f32 %v2305_v48, %v1903_v22  ;;  %v2307_v11 = vpop.f32.mrb[87].mxu0  ;;  %v2483_v22 = vld [vmem:[#allocation2 + $0xa8] sm:$0xff] (!%p3066_p11)  ;;  %v2484_v42 = vld [vmem:[#allocation2 + $0xb0] sm:$0xff] (!%p3066_p11)  ;;  %v2486_v48 = vld [vmem:[#allocation2 + $0xc0] sm:$0xff] (!%p3066_p11) }
 0x34d   : > { %2447 = vst [vmem:[#allocation2 + $0x1a8] sm:$0xff] %v2383_v2  ;;  %v2385_v23 = vadd.f32 %v2307_v11, %v1904_v33  ;;  %v3116_v33 = vpack.c.bf16 (!%p3066_p11), %v2483_v22, %v2482_v52  ;;  %v3117_v2 = vpack.c.bf16 (!%p3066_p11), %v2485_v41, %v2484_v42  ;;  %v2488_v11 = vld [vmem:[#allocation2 + $0xd0] sm:$0xff] (!%p3066_p11)  ;;  %2727 = vst [vmem:[#allocation9 + $0x48] sm:$0xff] (!%p3066_p11), %v3115_v10  ;;  %v2510_v38 = vld [vmem:[#allocation2 + $0x180] sm:$0xff] (!%p3066_p11) }
 0x34e   : > { %2448 = vst [vmem:[#allocation2 + $0x1b0] sm:$0xff] %v2384_v54  ;;  %v2487_v54 = vld [vmem:[#allocation2 + $0xc8] sm:$0xff] (!%p3066_p11)  ;;  %v2512_v6 = vld [vmem:[#allocation2 + $0x190] sm:$0xff] (!%p3066_p11)  ;;  %v2513_v57 = vld [vmem:[#allocation2 + $0x198] sm:$0xff] (!%p3066_p11) }
 0x34f   : > { %2449 = vst [vmem:[#allocation2 + $0x1b8] sm:$0xff] %v2385_v23  ;;  %v3118_v23 = vpack.c.bf16 (!%p3066_p11), %v2487_v54, %v2486_v48  ;;  %2728 = vst [vmem:[#allocation9 + $0x50] sm:$0xff] (!%p3066_p11), %v3116_v33  ;;  %v2511_v46 = vld [vmem:[#allocation2 + $0x188] sm:$0xff] (!%p3066_p11)  ;;  %v3131_v50 = vpack.c.bf16 (!%p3066_p11), %v2513_v57, %v2512_v6 }
 0x350   : > { %2729 = vst [vmem:[#allocation9 + $0x58] sm:$0xff] (!%p3066_p11), %v3117_v2  ;;  %v3130_v27 = vpack.c.bf16 (!%p3066_p11), %v2511_v46, %v2510_v38 }
 0x351   : > { %v2311_v29 = vpop.f32.mrb[88].mxu0  ;;  %2730 = vst [vmem:[#allocation9 + $0x60] sm:$0xff] (!%p3066_p11), %v3118_v23  ;;  %2743 = vst [vmem:[#allocation9 + $0xc8] sm:$0xff] (!%p3066_p11), %v3131_v50 }
 0x352   : > { %v2386_v58 = vadd.f32 %v2311_v29, %v1905_v32  ;;  %v2313_v55 = vpop.f32.mrb[89].mxu0  ;;  %v2489_v32 = vld [vmem:[#allocation2 + $0xd8] sm:$0xff] (!%p3066_p11)  ;;  %v2491_v29 = vld [vmem:[#allocation2 + $0xe8] sm:$0xff] (!%p3066_p11)  ;;  %2742 = vst [vmem:[#allocation9 + $0xc0] sm:$0xff] (!%p3066_p11), %v3130_v27 }
 0x353   : > { %v2387_v49 = vadd.f32 %v2313_v55, %v1906_v35  ;;  %v2315_v25 = vpop.f32.mrb[90].mxu0  ;;  %v2490_v35 = vld [vmem:[#allocation2 + $0xe0] sm:$0xff] (!%p3066_p11)  ;;  %v2492_v55 = vld [vmem:[#allocation2 + $0xf0] sm:$0xff] (!%p3066_p11) }
 0x354   : > { %2450 = vst [vmem:[#allocation2 + $0x1c0] sm:$0xff] %v2386_v58  ;;  %v2388_v56 = vadd.f32 %v2315_v25, %v1907_v45  ;;  %v2317_v12 = vpop.f32.mrb[91].mxu0  ;;  %v3119_v45 = vpack.c.bf16 (!%p3066_p11), %v2489_v32, %v2488_v11  ;;  %v3120_v58 = vpack.c.bf16 (!%p3066_p11), %v2491_v29, %v2490_v35  ;;  %v2514_v61 = vld [vmem:[#allocation2 + $0x1a0] sm:$0xff] (!%p3066_p11)  ;;  %v2515_v39 = vld [vmem:[#allocation2 + $0x1a8] sm:$0xff] (!%p3066_p11) }
 0x355   : > { %2451 = vst [vmem:[#allocation2 + $0x1c8] sm:$0xff] %v2387_v49  ;;  %v2389_v62 = vadd.f32 %v2317_v12, %v1908_v7  ;;  %v2493_v7 = vld [vmem:[#allocation2 + $0xf8] sm:$0xff] (!%p3066_p11)  ;;  %v2494_v49 = vld [vmem:[#allocation2 + $0x100] sm:$0xff] (!%p3066_p11)  ;;  %v2496_v12 = vld [vmem:[#allocation2 + $0x110] sm:$0xff] (!%p3066_p11)  ;;  %v3132_v4 = vpack.c.bf16 (!%p3066_p11), %v2515_v39, %v2514_v61 }
 0x356   : > { %2452 = vst [vmem:[#allocation2 + $0x1d0] sm:$0xff] %v2388_v56  ;;  %v3121_v25 = vpack.c.bf16 (!%p3066_p11), %v2493_v7, %v2492_v55  ;;  %v2495_v56 = vld [vmem:[#allocation2 + $0x108] sm:$0xff] (!%p3066_p11)  ;;  %2731 = vst [vmem:[#allocation9 + $0x68] sm:$0xff] (!%p3066_p11), %v3119_v45  ;;  %v2516_v51 = vld [vmem:[#allocation2 + $0x1b0] sm:$0xff] (!%p3066_p11) }
 0x357   : > { %2453 = vst [vmem:[#allocation2 + $0x1d8] sm:$0xff] %v2389_v62  ;;  %v2497_v62 = vld [vmem:[#allocation2 + $0x118] sm:$0xff] (!%p3066_p11)  ;;  %2732 = vst [vmem:[#allocation9 + $0x70] sm:$0xff] (!%p3066_p11), %v3120_v58 }
 0x358   : > { %2733 = vst [vmem:[#allocation9 + $0x78] sm:$0xff] (!%p3066_p11), %v3121_v25  ;;  %v2517_v24 = vld [vmem:[#allocation2 + $0x1b8] sm:$0xff] (!%p3066_p11)  ;;  %2744 = vst [vmem:[#allocation9 + $0xd0] sm:$0xff] (!%p3066_p11), %v3132_v4 }
 0x359   : > { %v2321_v40 = vpop.f32.mrb[92].mxu0  ;;  %2461 = sbr.rel (%p3066_p11) target bundleno = 874 (0x36a), region = 56  ;;  %v3133_v44 = vpack.c.bf16 (!%p3066_p11), %v2517_v24, %v2516_v51 }
 0x35a   : > { %v2390_v0 = vadd.f32 %v2321_v40, %v1909_v20  ;;  %v2323_v3 = vpop.f32.mrb[93].mxu0  ;;  %v3122_v20 = vpack.c.bf16 (!%p3066_p11), %v2495_v56, %v2494_v49  ;;  %v2498_v40 = vld [vmem:[#allocation2 + $0x120] sm:$0xff] (!%p3066_p11) }
 0x35b   : > { %v2391_v21 = vadd.f32 %v2323_v3, %v1910_v28  ;;  %v2325_v19 = vpop.f32.mrb[94].mxu0  ;;  %v3123_v28 = vpack.c.bf16 (!%p3066_p11), %v2497_v62, %v2496_v12  ;;  %v2518_v9 = vld [vmem:[#allocation2 + $0x1c0] sm:$0xff] (!%p3066_p11)  ;;  %2745 = vst [vmem:[#allocation9 + $0xd8] sm:$0xff] (!%p3066_p11), %v3133_v44 }
 0x35c   : > { %2454 = vst [vmem:[#allocation2 + $0x1e0] sm:$0xff] %v2390_v0  ;;  %v2392_v60 = vadd.f32 %v2325_v19, %v1911_v13  ;;  %v2327_v53 = vpop.f32.mrb[95].mxu0  ;;  %v2499_v13 = vld [vmem:[#allocation2 + $0x128] sm:$0xff] (!%p3066_p11)  ;;  %v2500_v0 = vld [vmem:[#allocation2 + $0x130] sm:$0xff] (!%p3066_p11)  ;;  %2734 = vst [vmem:[#allocation9 + $0x80] sm:$0xff] (!%p3066_p11), %v3122_v20 }
 0x35d   : > { %2455 = vst [vmem:[#allocation2 + $0x1e8] sm:$0xff] %v2391_v21  ;;  %v2393_v17 = vadd.f32 %v2327_v53, %v1912_v15  ;;  %v3124_v3 = vpack.c.bf16 (!%p3066_p11), %v2499_v13, %v2498_v40  ;;  %v2501_v15 = vld [vmem:[#allocation2 + $0x138] sm:$0xff] (!%p3066_p11)  ;;  %v2502_v21 = vld [vmem:[#allocation2 + $0x140] sm:$0xff] (!%p3066_p11)  ;;  %v2503_v19 = vld [vmem:[#allocation2 + $0x148] sm:$0xff] (!%p3066_p11) }
 0x35e   : > { %2456 = vst [vmem:[#allocation2 + $0x1f0] sm:$0xff] %v2392_v60  ;;  %2735 = vst [vmem:[#allocation9 + $0x88] sm:$0xff] (!%p3066_p11), %v3123_v28  ;;  %v3125_v60 = vpack.c.bf16 (!%p3066_p11), %v2501_v15, %v2500_v0  ;;  %v3126_v53 = vpack.c.bf16 (!%p3066_p11), %v2503_v19, %v2502_v21  ;;  %v2519_v47 = vld [vmem:[#allocation2 + $0x1c8] sm:$0xff] (!%p3066_p11)  ;;  %v2520_v34 = vld [vmem:[#allocation2 + $0x1d0] sm:$0xff] (!%p3066_p11) }
 0x35f   : > { %2457 = vst [vmem:[#allocation2 + $0x1f8] sm:$0xff] %v2393_v17  ;;  %v2504_v17 = vld [vmem:[#allocation2 + $0x150] sm:$0xff] (!%p3066_p11)  ;;  %2736 = vst [vmem:[#allocation9 + $0x90] sm:$0xff] (!%p3066_p11), %v3124_v3  ;;  %v2521_v63 = vld [vmem:[#allocation2 + $0x1d8] sm:$0xff] (!%p3066_p11)  ;;  %v3134_v30 = vpack.c.bf16 (!%p3066_p11), %v2519_v47, %v2518_v9 }
 0x360   : > { %v3127_v16 = vpack.c.bf16 %v2505_v43, %v2504_v17  ;;  %2737 = vst [vmem:[#allocation9 + $0x98] sm:$0xff] %v3125_v60  ;;  %2738 = vst [vmem:[#allocation9 + $0xa0] sm:$0xff] %v3126_v53  ;;  %v3135_v59 = vpack.c.bf16 %v2521_v63, %v2520_v34 }
 0x361   : > { %2746 = vst [vmem:[#allocation9 + $0xe0] sm:$0xff] %v3134_v30 }
 0x362   : > { %2739 = vst [vmem:[#allocation9 + $0xa8] sm:$0xff] %v3127_v16  ;;  %2747 = vst [vmem:[#allocation9 + $0xe8] sm:$0xff] %v3135_v59 }
 0x363   : > { %v2522_v5 = vld [vmem:[#allocation2 + $0x1e0] sm:$0xff] }
 0x364   : > { %v2523_v31 = vld [vmem:[#allocation2 + $0x1e8] sm:$0xff] }
 0x365   : > { %v2524_v26 = vld [vmem:[#allocation2 + $0x1f0] sm:$0xff]  ;;  %v3136_v52 = vpack.c.bf16 %v2523_v31, %v2522_v5 }
 0x366   : > { %v2525_v10 = vld [vmem:[#allocation2 + $0x1f8] sm:$0xff] }
 0x367   : > { %v3137_v22 = vpack.c.bf16 %v2525_v10, %v2524_v26  ;;  %2748 = vst [vmem:[#allocation9 + $0xf0] sm:$0xff] %v3136_v52 }
 0x369   : > { %2749 = vst [vmem:[#allocation9 + $0xf8] sm:$0xff] %v3137_v22 }
 0x36a PF: > { %p3196_p1 = scmp.eq.s32.totalorder %s4000_s12, 3  ;;  %s3883_s18 = smov [#allocation9]  }
 0x36b   : > { %s2760_s13 = sshll.u32 %s3883_s18, 4  ;;  %s2761_s13 = int_to_ptr.vmem [resolvable:$true] %s2760_s13 }
 0x36c   : > { %s3790_s30 = scalar_lea.vmem %s2761_s13, 4096  ;;  %p3797_p9 = scmp.lt.s32.totalorder %s2761_s13, %s2761_s13 }
 0x36d   : > { %p3791_p6 = scmp.ne.s32.totalorder %s2761_s13, %s3790_s30  ;;  %p3798_p12 = scmp.lt.s32.totalorder %s3790_s30, %s3790_s30 }
 0x36f   : > { %p3792_p4 = pnand %p3791_p6, %p3196_p1  ;;  %p3799_p10 = por %p3798_p12, %p3797_p9 }
 0x371   : > { %p3793_p7 = pneg %p3792_p4 }
 0x373   : > { %p3800_p0 = pnand %p3799_p10, %p3793_p7 }
 0x375   : > { %3803 = shalt.err (!%p3800_p0)
}
 0x376   : > { %s3804_s5 = scalar_lea.hbm %s4823_s4, 4096 }
 0x377   : > { %p3805_p8 = scmp.ne.s32.totalorder %s4823_s4, %s3804_s5  ;;  %p3810_p3 = scmp.lt.u32.totalorder %s3804_s5, %s4823_s4 }
 0x379   : > { %p3806_p2 = pnand %p3805_p8, %p3196_p1 }
 0x37b   : > { %p3807_p13 = pneg %p3806_p2 }
 0x37d   : > { %p3812_p5 = pnand %p3810_p3, %p3807_p13 }
 0x37f   : > { %3815 = shalt.err (!%p3812_p5)
}
 0x380   : > { %s3884_s24 = smov 128   ;;  %s3885_s23 = smov 8  }
 0x381   : > { %3179 = dma.vmem_to_hbm [thread:$0]  (%p3196_p1), %s2761_s13, 4096, %s4823_s4, [#allocation5], %s3884_s24, %s3884_s24, %s3885_s23  }
 0x382   : > { %3849 = dma.done.wait (%p3196_p1), [#allocation5], 4096  }
 0x383   : > { %3851 = vsyncadd (%p3196_p1), [#allocation5], 4294963200 }
 0x384 PF: > { %s19_s20 = sadd.s32 1, %s3874_s20   ;;  %s4928_s15 = smov %s3858_s16 }
 0x385   : > { %p16_p11 = scmp.ge.s32.totalorder %s19_s20, 6   ;;  %s4929_s16 = smov %s3862_s17 }
 0x386   : > { %s4930_s17 = smov %s3955_s27  ;;  %s4931_s18 = smov %s3870_s19 }
 0x387   : > { %s4932_s19 = smov %s4934_s21  ;;  %18 = sbr.rel (!%p16_p11) target bundleno = 6 (0x6), region = 99 }
 0x38e   :  { %2776 = vsyncpa [#allocation4], 1 }
 0x38f   :  { %2778 = vsyncpa [#allocation4 + $0x1], 1 }
 0x390   :  { %2779 = vsyncpa [#allocation7], 1 }
 0x391   :  { %2781 = vsyncpa [#allocation7 + $0x1], 1 }
 0x392   :  { %2782 = vsyncpa [#allocation5], 1 }
 0x393   :  { %2784 = vsyncpa [#allocation5 + $0x1], 1 }

</bundles_post_ra>
